<compile_context>
chip_gen: v6e
topology: v6e:2x2x1
jax: 0.10.0
libtpu: 0.0.40
codegen_flags: <defaults>
</compile_context>

<pallas_src>
import functools

import jax
import jax.numpy as jnp
from jax.experimental import pallas as pl
from jax.experimental.pallas import tpu as pltpu


def _pick_tile(dim, candidates):
    """Largest candidate that evenly divides dim, else the full dim."""
    for c in candidates:
        if c <= dim and dim % c == 0:
            return c
    return dim


@functools.lru_cache(maxsize=None)
def _vmem_limit_bytes():
    """min(64 MiB, 3/4 of physical VMEM) — raised vs default on v5e/v6e,
    safely below physical on v7x."""
    try:
        cap = int(pltpu.get_tpu_info().vmem_capacity_bytes)
    except Exception:
        cap = 128 * 1024 * 1024
    return int(min(64 * 1024 * 1024, (cap * 3) // 4))


# ------------------- tiled linear: y = x @ w + b (opt. ReLU) -------------------

def _linear_kernel(x_ref, w_ref, b_ref, o_ref, acc_ref, *, activation):
    @pl.when(pl.program_id(2) == 0)
    def _init():
        acc_ref[...] = jnp.zeros_like(acc_ref)

    # x and w are already bf16 — feed the MXU directly, accumulate in f32.
    acc_ref[...] += jnp.dot(x_ref[...], w_ref[...],
                            preferred_element_type=jnp.float32)

    @pl.when(pl.program_id(2) == pl.num_programs(2) - 1)
    def _finalize():
        y = acc_ref[...] + b_ref[...].astype(jnp.float32)
        if activation == "relu":
            y = jnp.maximum(y, 0.0)
        o_ref[...] = y.astype(o_ref.dtype)


def pallas_linear(x, w, b, activation=None, out_dtype=jnp.bfloat16):
    """x:(M,K) bf16, w:(K,N) bf16, b:(N,) f32 -> (M,N) out_dtype."""
    M, K = x.shape
    N = w.shape[1]

    # Pad N to a multiple of 128 (e.g. real GPT-2 vocab 50257 -> 50304) so we
    # never fall back to a whole-N tile / masked lane stores.
    if N > 128 and N % 128 != 0:
        pad = (-N) % 128
        w = jnp.pad(w, ((0, 0), (0, pad)))
        b = jnp.pad(b, ((0, pad),))
        out = pallas_linear(x, w, b, activation=activation, out_dtype=out_dtype)
        return out[:, :N]

    tm = _pick_tile(M, (512, 256, 128))
    tn = _pick_tile(N, (512, 256, 128))
    tk = _pick_tile(K, (512, 256, 128))
    grid = (M // tm, N // tn, K // tk)
    kernel = functools.partial(_linear_kernel, activation=activation)
    bytes_accessed = (M * K * x.dtype.itemsize + K * N * w.dtype.itemsize
                      + M * N * jnp.dtype(out_dtype).itemsize + N * 4)
    return pl.pallas_call(
        kernel,
        out_shape=jax.ShapeDtypeStruct((M, N), out_dtype),
        grid=grid,
        in_specs=[
            pl.BlockSpec((tm, tk), lambda i, j, k: (i, k)),
            pl.BlockSpec((tk, tn), lambda i, j, k: (k, j)),
            pl.BlockSpec((1, tn), lambda i, j, k: (0, j)),
        ],
        out_specs=pl.BlockSpec((tm, tn), lambda i, j, k: (i, j)),
        scratch_shapes=[pltpu.VMEM((tm, tn), jnp.float32)],
        compiler_params=pltpu.CompilerParams(
            dimension_semantics=("parallel", "parallel", "arbitrary"),
            vmem_limit_bytes=_vmem_limit_bytes()),
        cost_estimate=pl.CostEstimate(
            flops=2 * M * N * K, transcendentals=0,
            bytes_accessed=bytes_accessed),
    )(x, w, b.reshape(1, -1))


# ------------------ fused residual-add + LayerNorm (row-tiled) ------------------

def _ln_residual_kernel(x_ref, r_ref, g_ref, b_ref, o_ref, *, eps):
    v = x_ref[...].astype(jnp.float32) + r_ref[...].astype(jnp.float32)
    mean = jnp.mean(v, axis=-1, keepdims=True)
    var = jnp.mean(jnp.square(v - mean), axis=-1, keepdims=True)
    y = (v - mean) * jax.lax.rsqrt(var + eps)
    o_ref[...] = (y * g_ref[...].astype(jnp.float32)
                  + b_ref[...].astype(jnp.float32)).astype(o_ref.dtype)


def pallas_residual_layernorm(x, r, gamma, beta, eps=1e-5):
    """LayerNorm(x + r) over last dim. x,r:(M,D) bf16 -> (M,D) bf16."""
    M, D = x.shape
    tm = _pick_tile(M, (512, 256, 128))   # capped at 512 so v5e's VMEM is safe
    kernel = functools.partial(_ln_residual_kernel, eps=eps)
    return pl.pallas_call(
        kernel,
        out_shape=jax.ShapeDtypeStruct((M, D), jnp.bfloat16),
        grid=(M // tm,),
        in_specs=[
            pl.BlockSpec((tm, D), lambda i: (i, 0)),
            pl.BlockSpec((tm, D), lambda i: (i, 0)),
            pl.BlockSpec((1, D), lambda i: (0, 0)),
            pl.BlockSpec((1, D), lambda i: (0, 0)),
        ],
        out_specs=pl.BlockSpec((tm, D), lambda i: (i, 0)),
        compiler_params=pltpu.CompilerParams(
            dimension_semantics=("parallel",),
            vmem_limit_bytes=_vmem_limit_bytes()),
    )(x, r, gamma.reshape(1, D), beta.reshape(1, D))


# ------------------------------ attention ------------------------------

def _attention_kernel(q_ref, k_ref, v_ref, o_ref, *, nhead, scale):
    q = q_ref[0]                    # (tq, D) bf16, scaled below
    k = k_ref[0]                    # (S, D) bf16
    v = v_ref[0]                    # (S, D) bf16
    D = q.shape[-1]
    dh = D // nhead
    qs = q * scale                  # scale q once (bf16, tq*D mults)

    # Process heads in pairs: two (tq, dh) outputs are stored together as one
    # lane-dense 2*dh-wide write, avoiding a full (tq, D) concatenate and the
    # per-head masked stores.
    h = 0
    while h < nhead:
        pair = min(2, nhead - h)
        outs = []
        for hh in range(h, h + pair):
            qh = qs[:, hh * dh:(hh + 1) * dh]
            kh = k[:, hh * dh:(hh + 1) * dh]
            vh = v[:, hh * dh:(hh + 1) * dh]
            s = jnp.dot(qh, kh.T, preferred_element_type=jnp.float32)   # (tq, S)
            s = s - jnp.max(s, axis=-1, keepdims=True)
            p = jnp.exp(s)
            p = p * pl.reciprocal(jnp.sum(p, axis=-1, keepdims=True), approx=True)
            outs.append(jnp.dot(p.astype(jnp.bfloat16), vh,
                                preferred_element_type=jnp.float32))     # (tq, dh)
        blk = outs[0] if pair == 1 else jnp.concatenate(outs, axis=-1)
        o_ref[0, :, h * dh:(h + pair) * dh] = blk.astype(o_ref.dtype)
        h += pair


def pallas_attention(qkv_bsd, nhead):
    """softmax(q k^T / sqrt(dh)) v per batch. qkv:(B, S, 3D) bf16 -> (B, S, D) bf16.

    q / k / v are carved out of the fused buffer purely via BlockSpec block
    indices along the last axis (block size D, block index 0/1/2), and the
    query dimension is tiled so long sequences stay within VMEM and give the
    grid more parallel work.
    """
    # TODO(synk): for very long sequences this should become a flash-style
    # online-softmax with a second grid axis over K/V tiles.
    B, S, three_d = qkv_bsd.shape
    D = three_d // 3
    dh = D // nhead
    tq = _pick_tile(S, (256, 128))
    kernel = functools.partial(_attention_kernel, nhead=nhead,
                               scale=1.0 / float(dh) ** 0.5)
    return pl.pallas_call(
        kernel,
        out_shape=jax.ShapeDtypeStruct((B, S, D), jnp.bfloat16),
        grid=(B, S // tq),
        in_specs=[
            pl.BlockSpec((1, tq, D), lambda b, qi: (b, qi, 0)),   # q columns
            pl.BlockSpec((1, S, D), lambda b, qi: (b, 0, 1)),     # k columns
            pl.BlockSpec((1, S, D), lambda b, qi: (b, 0, 2)),     # v columns
        ],
        out_specs=pl.BlockSpec((1, tq, D), lambda b, qi: (b, qi, 0)),
        compiler_params=pltpu.CompilerParams(
            dimension_semantics=("parallel", "arbitrary"),
            vmem_limit_bytes=_vmem_limit_bytes()),
    )(qkv_bsd, qkv_bsd, qkv_bsd)


# ------------------------------- Model glue -------------------------------

def init_params(key, vocab_size, d_model, nhead, num_layers, dim_ff):
    del nhead  # head split is a view of d_model, no extra params
    keys = jax.random.split(key, 2 + num_layers)

    def w(k, shape):  # weights kept in bf16 to feed the MXU / halve weight DMA
        return (0.02 * jax.random.normal(k, shape, jnp.float32)).astype(jnp.bfloat16)

    params = {
        "embedding": w(keys[0], (vocab_size, d_model)),
        "fc_w": w(keys[1], (d_model, vocab_size)),
        "fc_b": jnp.zeros((vocab_size,), jnp.float32),
        "layers": [],
    }
    for l in range(num_layers):
        k = jax.random.split(keys[2 + l], 4)
        params["layers"].append({
            "w_qkv": w(k[0], (d_model, 3 * d_model)),
            "b_qkv": jnp.zeros((3 * d_model,), jnp.float32),
            "w_out": w(k[1], (d_model, d_model)),
            "b_out": jnp.zeros((d_model,), jnp.float32),
            "ln1_g": jnp.ones((d_model,), jnp.float32),
            "ln1_b": jnp.zeros((d_model,), jnp.float32),
            "w_ff1": w(k[2], (d_model, dim_ff)),
            "b_ff1": jnp.zeros((dim_ff,), jnp.float32),
            "w_ff2": w(k[3], (dim_ff, d_model)),
            "b_ff2": jnp.zeros((d_model,), jnp.float32),
            "ln2_g": jnp.ones((d_model,), jnp.float32),
            "ln2_b": jnp.zeros((d_model,), jnp.float32),
        })
    return params


def gpt2_small_forward(params, token_ids, nhead):
    """token_ids: (S, B) int32 -> logits (S, B, vocab) f32."""
    S, B = token_ids.shape
    D = params["embedding"].shape[1]
    M = B * S

    # Embedding lookup (gather) kept as XLA glue; rows stored batch-major so
    # the attention kernel views the QKV buffer as (B, S, 3D) for free.
    x = jnp.take(params["embedding"], token_ids.T, axis=0)     # (B, S, D) bf16
    x2 = x.reshape(M, D)

    # TODO(synk): spec module has no causal mask / positional embedding
    # (plain nn.TransformerEncoder over token embeddings); semantics kept as-is.
    for lp in params["layers"]:
        # ---- self-attention block (MultiheadAttention, post-LN residual) ----
        qkv = pallas_linear(x2, lp["w_qkv"], lp["b_qkv"])             # (M, 3D) bf16
        attn = pallas_attention(qkv.reshape(B, S, 3 * D), nhead)      # (B, S, D) bf16
        attn = pallas_linear(attn.reshape(M, D), lp["w_out"], lp["b_out"])
        x2 = pallas_residual_layernorm(x2, attn, lp["ln1_g"], lp["ln1_b"])

        # ---- feed-forward block (ReLU) ----
        ff = pallas_linear(x2, lp["w_ff1"], lp["b_ff1"], activation="relu")
        ff = pallas_linear(ff, lp["w_ff2"], lp["b_ff2"])
        x2 = pallas_residual_layernorm(x2, ff, lp["ln2_g"], lp["ln2_b"])

    # LM head: tiled over the (padded) vocab dim; f32 output since this is the
    # final tensor (a bf16 emit + later f32 cast would move the same bytes).
    logits = pallas_linear(x2, params["fc_w"], params["fc_b"],
                           out_dtype=jnp.float32)                     # (M, V)
    # TODO(synk): final transpose back to (S, B, V) stays in XLA.
    return logits.reshape(B, S, -1).transpose(1, 0, 2)                # (S, B, V)


# TODO(synk): dropout inside nn.TransformerEncoderLayer is stochastic in train
# mode; this implementation uses eval-mode semantics (dropout = identity).

if __name__ == "__main__":
    # Small shapes consistent with the module (scaled-down GPT2Small).
    vocab_size = 512
    d_model = 128
    nhead = 4
    num_layers = 2
    dim_ff = 256
    S, B = 8, 2

    key = jax.random.PRNGKey(0)
    pkey, xkey = jax.random.split(key)
    params = init_params(pkey, vocab_size, d_model, nhead, num_layers, dim_ff)
    token_ids = jax.random.randint(xkey, (S, B), 0, vocab_size, dtype=jnp.int32)

    forward = jax.jit(functools.partial(gpt2_small_forward, nhead=nhead))
    logits = forward(params, token_ids)
    logits = jax.block_until_ready(logits)
    assert logits.shape == (S, B, vocab_size)
    assert logits.dtype == jnp.float32
    print("KERNEL_OK")
</pallas_src>

<mosaic_0001>
module attributes {stable_mosaic.version = 11 : i64} {
  func.func @_linear_kernel(%arg0: i32, %arg1: i32, %arg2: i32, %arg3: memref<16x128xbf16, #tpu.memory_space<vmem>>, %arg4: memref<128x128xbf16, #tpu.memory_space<vmem>>, %arg5: memref<1x128xf32, #tpu.memory_space<vmem>>, %arg6: memref<16x128xbf16, #tpu.memory_space<vmem>>, %arg7: memref<16x128xf32, #tpu.memory_space<vmem>>) attributes {dimension_semantics = [#tpu.dimension_semantics<parallel>, #tpu.dimension_semantics<parallel>, #tpu.dimension_semantics<arbitrary>], iteration_bounds = array<i64: 1, 1, 1>, scalar_prefetch = 0 : i64, scratch_operands = 1 : i64, tpu.core_type = #tpu.core_type<tc>, window_params = [{transform_indices = @transform_0, window_bounds = array<i64: 16, 128>}, {transform_indices = @transform_1, window_bounds = array<i64: 128, 128>}, {transform_indices = @transform_2, window_bounds = array<i64: 1, 128>}, {transform_indices = @transform_3, window_bounds = array<i64: 16, 128>}]} {
    %c0_i32 = arith.constant 0 : i32
    %0 = arith.cmpi eq, %arg2, %c0_i32 : i32
    %1 = arith.extui %0 : i1 to i32
    %c0_i32_0 = arith.constant 0 : i32
    %2 = arith.cmpi ne, %1, %c0_i32_0 : i32
    scf.if %2 {
      %cst_10 = arith.constant 0.000000e+00 : f32
      %12 = vector.broadcast %cst_10 : f32 to vector<16x128xf32>
      %c0_11 = arith.constant 0 : index
      %c0_12 = arith.constant 0 : index
      %13 = vector.load %arg7[%c0_11, %c0_12] : memref<16x128xf32, #tpu.memory_space<vmem>>, vector<16x128xf32>
      tpu.vector_store %arg7[%c0_11, %c0_12], %12 {strides = array<i32>} : memref<16x128xf32, #tpu.memory_space<vmem>>, vector<16x128xf32>,
    } else {
    }
    %c0 = arith.constant 0 : index
    %c0_1 = arith.constant 0 : index
    %3 = vector.load %arg7[%c0, %c0_1] : memref<16x128xf32, #tpu.memory_space<vmem>>, vector<16x128xf32>
    %c0_2 = arith.constant 0 : index
    %c0_3 = arith.constant 0 : index
    %4 = vector.load %arg3[%c0_2, %c0_3] : memref<16x128xbf16, #tpu.memory_space<vmem>>, vector<16x128xbf16>
    %c0_4 = arith.constant 0 : index
    %c0_5 = arith.constant 0 : index
    %5 = vector.load %arg4[%c0_4, %c0_5] : memref<128x128xbf16, #tpu.memory_space<vmem>>, vector<128x128xbf16>
    %cst = arith.constant dense<0.000000e+00> : vector<16x128xf32>
    %6 = tpu.matmul %4, %5, %cst {dimension_numbers = #tpu.dot_dimension_numbers<[1], [0], [0], [1], [0, 0, 1, 1], [], []>} : vector<16x128xbf16>, vector<128x128xbf16>, vector<16x128xf32> -> vector<16x128xf32>
    %7 = arith.addf %3, %6 : vector<16x128xf32>
    %c0_6 = arith.constant 0 : index
    %c0_7 = arith.constant 0 : index
    %8 = vector.load %arg7[%c0_6, %c0_7] : memref<16x128xf32, #tpu.memory_space<vmem>>, vector<16x128xf32>
    tpu.vector_store %arg7[%c0_6, %c0_7], %7 {strides = array<i32>} : memref<16x128xf32, #tpu.memory_space<vmem>>, vector<16x128xf32>,
    %c0_i32_8 = arith.constant 0 : i32
    %9 = arith.cmpi eq, %arg2, %c0_i32_8 : i32
    %10 = arith.extui %9 : i1 to i32
    %c0_i32_9 = arith.constant 0 : i32
    %11 = arith.cmpi ne, %10, %c0_i32_9 : i32
    scf.if %11 {
      %c0_10 = arith.constant 0 : index
      %c0_11 = arith.constant 0 : index
      %12 = vector.load %arg7[%c0_10, %c0_11] : memref<16x128xf32, #tpu.memory_space<vmem>>, vector<16x128xf32>
      %c0_12 = arith.constant 0 : index
      %c0_13 = arith.constant 0 : index
      %13 = vector.load %arg5[%c0_12, %c0_13] : memref<1x128xf32, #tpu.memory_space<vmem>>, vector<1x128xf32>
      %14 = vector.broadcast %13 : vector<1x128xf32> to vector<16x128xf32>
      %15 = arith.addf %12, %14 : vector<16x128xf32>
      %16 = arith.truncf %15 : vector<16x128xf32> to vector<16x128xbf16>
      %c0_14 = arith.constant 0 : index
      %c0_15 = arith.constant 0 : index
      %17 = vector.load %arg6[%c0_14, %c0_15] : memref<16x128xbf16, #tpu.memory_space<vmem>>, vector<16x128xbf16>
      tpu.vector_store %arg6[%c0_14, %c0_15], %16 {strides = array<i32>} : memref<16x128xbf16, #tpu.memory_space<vmem>>, vector<16x128xbf16>,
    } else {
    }
    return
  }
  func.func @transform_0(%arg0: i32, %arg1: i32, %arg2: i32) -> (i32, i32) {
    %c0_i32 = arith.constant 0 : i32
    return %arg0, %arg2 : i32, i32
  }
  func.func @transform_1(%arg0: i32, %arg1: i32, %arg2: i32) -> (i32, i32) {
    %c0_i32 = arith.constant 0 : i32
    return %arg2, %arg1 : i32, i32
  }
  func.func @transform_2(%arg0: i32, %arg1: i32, %arg2: i32) -> (i32, i32) {
    %c0_i32 = arith.constant 0 : i32
    %c0_i32_0 = arith.constant 0 : i32
    return %c0_i32, %arg1 : i32, i32
  }
  func.func @transform_3(%arg0: i32, %arg1: i32, %arg2: i32) -> (i32, i32) {
    %c0_i32 = arith.constant 0 : i32
    return %arg0, %arg1 : i32, i32
  }
}

module attributes {stable_mosaic.version = 11 : i64} {
  func.func @_ln_residual_kernel(%arg0: i32, %arg1: memref<16x128xbf16, #tpu.memory_space<vmem>>, %arg2: memref<16x128xbf16, #tpu.memory_space<vmem>>, %arg3: memref<1x128xf32, #tpu.memory_space<vmem>>, %arg4: memref<1x128xf32, #tpu.memory_space<vmem>>, %arg5: memref<16x128xbf16, #tpu.memory_space<vmem>>) attributes {dimension_semantics = [#tpu.dimension_semantics<parallel>], iteration_bounds = array<i64: 1>, scalar_prefetch = 0 : i64, scratch_operands = 0 : i64, tpu.core_type = #tpu.core_type<tc>, window_params = [{transform_indices = @transform_0, window_bounds = array<i64: 16, 128>}, {transform_indices = @transform_1, window_bounds = array<i64: 16, 128>}, {pipeline_mode = #tpu.pipeline_mode<synchronous>, transform_indices = @transform_2, window_bounds = array<i64: 1, 128>}, {pipeline_mode = #tpu.pipeline_mode<synchronous>, transform_indices = @transform_3, window_bounds = array<i64: 1, 128>}, {transform_indices = @transform_4, window_bounds = array<i64: 16, 128>}]} {
    %c0 = arith.constant 0 : index
    %c0_0 = arith.constant 0 : index
    %0 = vector.load %arg1[%c0, %c0_0] : memref<16x128xbf16, #tpu.memory_space<vmem>>, vector<16x128xbf16>
    %1 = arith.extf %0 : vector<16x128xbf16> to vector<16x128xf32>
    %c0_1 = arith.constant 0 : index
    %c0_2 = arith.constant 0 : index
    %2 = vector.load %arg2[%c0_1, %c0_2] : memref<16x128xbf16, #tpu.memory_space<vmem>>, vector<16x128xbf16>
    %3 = arith.extf %2 : vector<16x128xbf16> to vector<16x128xf32>
    %4 = arith.addf %1, %3 : vector<16x128xf32>
    %cst = arith.constant dense<0.000000e+00> : vector<16xf32>
    %5 = vector.multi_reduction <add>, %4, %cst [1] : vector<16x128xf32> to vector<16xf32>
    %6 = vector.shape_cast %5 : vector<16xf32> to vector<16x1xf32>
    %cst_3 = arith.constant 1.280000e+02 : f32
    %7 = vector.broadcast %cst_3 : f32 to vector<16x1xf32>
    %8 = arith.divf %6, %7 : vector<16x1xf32>
    %9 = vector.broadcast %8 : vector<16x1xf32> to vector<16x128xf32>
    %10 = arith.subf %4, %9 : vector<16x128xf32>
    %11 = arith.mulf %10, %10 : vector<16x128xf32>
    %cst_4 = arith.constant dense<0.000000e+00> : vector<16xf32>
    %12 = vector.multi_reduction <add>, %11, %cst_4 [1] : vector<16x128xf32> to vector<16xf32>
    %13 = vector.shape_cast %12 : vector<16xf32> to vector<16x1xf32>
    %cst_5 = arith.constant 1.280000e+02 : f32
    %14 = vector.broadcast %cst_5 : f32 to vector<16x1xf32>
    %15 = arith.divf %13, %14 : vector<16x1xf32>
    %16 = vector.broadcast %8 : vector<16x1xf32> to vector<16x128xf32>
    %17 = arith.subf %4, %16 : vector<16x128xf32>
    %cst_6 = arith.constant 9.99999974E-6 : f32
    %18 = vector.broadcast %cst_6 : f32 to vector<16x1xf32>
    %19 = arith.addf %15, %18 : vector<16x1xf32>
    %20 = math.rsqrt %19 : vector<16x1xf32>
    %21 = vector.broadcast %20 : vector<16x1xf32> to vector<16x128xf32>
    %22 = arith.mulf %17, %21 : vector<16x128xf32>
    %c0_7 = arith.constant 0 : index
    %c0_8 = arith.constant 0 : index
    %23 = vector.load %arg3[%c0_7, %c0_8] : memref<1x128xf32, #tpu.memory_space<vmem>>, vector<1x128xf32>
    %24 = vector.broadcast %23 : vector<1x128xf32> to vector<16x128xf32>
    %25 = arith.mulf %22, %24 : vector<16x128xf32>
    %c0_9 = arith.constant 0 : index
    %c0_10 = arith.constant 0 : index
    %26 = vector.load %arg4[%c0_9, %c0_10] : memref<1x128xf32, #tpu.memory_space<vmem>>, vector<1x128xf32>
    %27 = vector.broadcast %26 : vector<1x128xf32> to vector<16x128xf32>
    %28 = arith.addf %25, %27 : vector<16x128xf32>
    %29 = arith.truncf %28 : vector<16x128xf32> to vector<16x128xbf16>
    %c0_11 = arith.constant 0 : index
    %c0_12 = arith.constant 0 : index
    %30 = vector.load %arg5[%c0_11, %c0_12] : memref<16x128xbf16, #tpu.memory_space<vmem>>, vector<16x128xbf16>
    tpu.vector_store %arg5[%c0_11, %c0_12], %29 {strides = array<i32>} : memref<16x128xbf16, #tpu.memory_space<vmem>>, vector<16x128xbf16>,
    return
  }
  func.func @transform_0(%arg0: i32) -> (i32, i32) {
    %c0_i32 = arith.constant 0 : i32
    %c0_i32_0 = arith.constant 0 : i32
    return %arg0, %c0_i32 : i32, i32
  }
  func.func @transform_1(%arg0: i32) -> (i32, i32) {
    %c0_i32 = arith.constant 0 : i32
    %c0_i32_0 = arith.constant 0 : i32
    return %arg0, %c0_i32 : i32, i32
  }
  func.func @transform_2(%arg0: i32) -> (i32, i32) {
    %c0_i32 = arith.constant 0 : i32
    %c0_i32_0 = arith.constant 0 : i32
    %c0_i32_1 = arith.constant 0 : i32
    return %c0_i32, %c0_i32_0 : i32, i32
  }
  func.func @transform_3(%arg0: i32) -> (i32, i32) {
    %c0_i32 = arith.constant 0 : i32
    %c0_i32_0 = arith.constant 0 : i32
    %c0_i32_1 = arith.constant 0 : i32
    return %c0_i32, %c0_i32_0 : i32, i32
  }
  func.func @transform_4(%arg0: i32) -> (i32, i32) {
    %c0_i32 = arith.constant 0 : i32
    %c0_i32_0 = arith.constant 0 : i32
    return %arg0, %c0_i32 : i32, i32
  }
}

module attributes {stable_mosaic.version = 11 : i64} {
  func.func @_linear_kernel(%arg0: i32, %arg1: i32, %arg2: i32, %arg3: memref<16x128xbf16, #tpu.memory_space<vmem>>, %arg4: memref<128x128xbf16, #tpu.memory_space<vmem>>, %arg5: memref<1x128xf32, #tpu.memory_space<vmem>>, %arg6: memref<16x128xbf16, #tpu.memory_space<vmem>>, %arg7: memref<16x128xf32, #tpu.memory_space<vmem>>) attributes {dimension_semantics = [#tpu.dimension_semantics<parallel>, #tpu.dimension_semantics<parallel>, #tpu.dimension_semantics<arbitrary>], iteration_bounds = array<i64: 1, 3, 1>, scalar_prefetch = 0 : i64, scratch_operands = 1 : i64, tpu.core_type = #tpu.core_type<tc>, window_params = [{transform_indices = @transform_0, window_bounds = array<i64: 16, 128>}, {transform_indices = @transform_1, window_bounds = array<i64: 128, 128>}, {transform_indices = @transform_2, window_bounds = array<i64: 1, 128>}, {transform_indices = @transform_3, window_bounds = array<i64: 16, 128>}]} {
    %c0_i32 = arith.constant 0 : i32
    %0 = arith.cmpi eq, %arg2, %c0_i32 : i32
    %1 = arith.extui %0 : i1 to i32
    %c0_i32_0 = arith.constant 0 : i32
    %2 = arith.cmpi ne, %1, %c0_i32_0 : i32
    scf.if %2 {
      %cst_10 = arith.constant 0.000000e+00 : f32
      %12 = vector.broadcast %cst_10 : f32 to vector<16x128xf32>
      %c0_11 = arith.constant 0 : index
      %c0_12 = arith.constant 0 : index
      %13 = vector.load %arg7[%c0_11, %c0_12] : memref<16x128xf32, #tpu.memory_space<vmem>>, vector<16x128xf32>
      tpu.vector_store %arg7[%c0_11, %c0_12], %12 {strides = array<i32>} : memref<16x128xf32, #tpu.memory_space<vmem>>, vector<16x128xf32>,
    } else {
    }
    %c0 = arith.constant 0 : index
    %c0_1 = arith.constant 0 : index
    %3 = vector.load %arg7[%c0, %c0_1] : memref<16x128xf32, #tpu.memory_space<vmem>>, vector<16x128xf32>
    %c0_2 = arith.constant 0 : index
    %c0_3 = arith.constant 0 : index
    %4 = vector.load %arg3[%c0_2, %c0_3] : memref<16x128xbf16, #tpu.memory_space<vmem>>, vector<16x128xbf16>
    %c0_4 = arith.constant 0 : index
    %c0_5 = arith.constant 0 : index
    %5 = vector.load %arg4[%c0_4, %c0_5] : memref<128x128xbf16, #tpu.memory_space<vmem>>, vector<128x128xbf16>
    %cst = arith.constant dense<0.000000e+00> : vector<16x128xf32>
    %6 = tpu.matmul %4, %5, %cst {dimension_numbers = #tpu.dot_dimension_numbers<[1], [0], [0], [1], [0, 0, 1, 1], [], []>} : vector<16x128xbf16>, vector<128x128xbf16>, vector<16x128xf32> -> vector<16x128xf32>
    %7 = arith.addf %3, %6 : vector<16x128xf32>
    %c0_6 = arith.constant 0 : index
    %c0_7 = arith.constant 0 : index
    %8 = vector.load %arg7[%c0_6, %c0_7] : memref<16x128xf32, #tpu.memory_space<vmem>>, vector<16x128xf32>
    tpu.vector_store %arg7[%c0_6, %c0_7], %7 {strides = array<i32>} : memref<16x128xf32, #tpu.memory_space<vmem>>, vector<16x128xf32>,
    %c0_i32_8 = arith.constant 0 : i32
    %9 = arith.cmpi eq, %arg2, %c0_i32_8 : i32
    %10 = arith.extui %9 : i1 to i32
    %c0_i32_9 = arith.constant 0 : i32
    %11 = arith.cmpi ne, %10, %c0_i32_9 : i32
    scf.if %11 {
      %c0_10 = arith.constant 0 : index
      %c0_11 = arith.constant 0 : index
      %12 = vector.load %arg7[%c0_10, %c0_11] : memref<16x128xf32, #tpu.memory_space<vmem>>, vector<16x128xf32>
      %c0_12 = arith.constant 0 : index
      %c0_13 = arith.constant 0 : index
      %13 = vector.load %arg5[%c0_12, %c0_13] : memref<1x128xf32, #tpu.memory_space<vmem>>, vector<1x128xf32>
      %14 = vector.broadcast %13 : vector<1x128xf32> to vector<16x128xf32>
      %15 = arith.addf %12, %14 : vector<16x128xf32>
      %16 = arith.truncf %15 : vector<16x128xf32> to vector<16x128xbf16>
      %c0_14 = arith.constant 0 : index
      %c0_15 = arith.constant 0 : index
      %17 = vector.load %arg6[%c0_14, %c0_15] : memref<16x128xbf16, #tpu.memory_space<vmem>>, vector<16x128xbf16>
      tpu.vector_store %arg6[%c0_14, %c0_15], %16 {strides = array<i32>} : memref<16x128xbf16, #tpu.memory_space<vmem>>, vector<16x128xbf16>,
    } else {
    }
    return
  }
  func.func @transform_0(%arg0: i32, %arg1: i32, %arg2: i32) -> (i32, i32) {
    %c0_i32 = arith.constant 0 : i32
    return %arg0, %arg2 : i32, i32
  }
  func.func @transform_1(%arg0: i32, %arg1: i32, %arg2: i32) -> (i32, i32) {
    %c0_i32 = arith.constant 0 : i32
    return %arg2, %arg1 : i32, i32
  }
  func.func @transform_2(%arg0: i32, %arg1: i32, %arg2: i32) -> (i32, i32) {
    %c0_i32 = arith.constant 0 : i32
    %c0_i32_0 = arith.constant 0 : i32
    return %c0_i32, %arg1 : i32, i32
  }
  func.func @transform_3(%arg0: i32, %arg1: i32, %arg2: i32) -> (i32, i32) {
    %c0_i32 = arith.constant 0 : i32
    return %arg0, %arg1 : i32, i32
  }
}

module attributes {stable_mosaic.version = 11 : i64} {
  func.func @_attention_kernel(%arg0: i32, %arg1: i32, %arg2: memref<1x8x128xbf16, #tpu.memory_space<vmem>>, %arg3: memref<1x8x128xbf16, #tpu.memory_space<vmem>>, %arg4: memref<1x8x128xbf16, #tpu.memory_space<vmem>>, %arg5: memref<1x8x128xbf16, #tpu.memory_space<vmem>>) attributes {dimension_semantics = [#tpu.dimension_semantics<parallel>, #tpu.dimension_semantics<arbitrary>], iteration_bounds = array<i64: 2, 1>, scalar_prefetch = 0 : i64, scratch_operands = 0 : i64, tpu.core_type = #tpu.core_type<tc>, window_params = [{transform_indices = @transform_0, window_bounds = array<i64: 1, 8, 128>}, {transform_indices = @transform_1, window_bounds = array<i64: 1, 8, 128>}, {transform_indices = @transform_2, window_bounds = array<i64: 1, 8, 128>}, {transform_indices = @transform_3, window_bounds = array<i64: 1, 8, 128>}]} {
    %c0 = arith.constant 0 : index
    %c0_0 = arith.constant 0 : index
    %c0_1 = arith.constant 0 : index
    %0 = vector.load %arg2[%c0, %c0_0, %c0_1] : memref<1x8x128xbf16, #tpu.memory_space<vmem>>, vector<1x8x128xbf16>
    %1 = vector.shape_cast %0 : vector<1x8x128xbf16> to vector<8x128xbf16>
    %c0_2 = arith.constant 0 : index
    %c0_3 = arith.constant 0 : index
    %c0_4 = arith.constant 0 : index
    %2 = vector.load %arg3[%c0_2, %c0_3, %c0_4] : memref<1x8x128xbf16, #tpu.memory_space<vmem>>, vector<1x8x128xbf16>
    %3 = vector.shape_cast %2 : vector<1x8x128xbf16> to vector<8x128xbf16>
    %c0_5 = arith.constant 0 : index
    %c0_6 = arith.constant 0 : index
    %c0_7 = arith.constant 0 : index
    %4 = vector.load %arg4[%c0_5, %c0_6, %c0_7] : memref<1x8x128xbf16, #tpu.memory_space<vmem>>, vector<1x8x128xbf16>
    %5 = vector.shape_cast %4 : vector<1x8x128xbf16> to vector<8x128xbf16>
    %cst = arith.constant 1.767580e-01 : bf16
    %6 = vector.broadcast %cst : bf16 to vector<8x128xbf16>
    %7 = arith.mulf %1, %6 : vector<8x128xbf16>
    %8 = vector.extract_strided_slice %7 {offsets = [0, 0], sizes = [8, 32], strides = [1, 1]} : vector<8x128xbf16> to vector<8x32xbf16>
    %9 = vector.extract_strided_slice %3 {offsets = [0, 0], sizes = [8, 32], strides = [1, 1]} : vector<8x128xbf16> to vector<8x32xbf16>
    %10 = vector.extract_strided_slice %5 {offsets = [0, 0], sizes = [8, 32], strides = [1, 1]} : vector<8x128xbf16> to vector<8x32xbf16>
    %11 = tpu.transpose %9, [1, 0] : vector<8x32xbf16> -> vector<32x8xbf16>
    %cst_8 = arith.constant dense<0.000000e+00> : vector<8x8xf32>
    %12 = tpu.matmul %8, %11, %cst_8 {dimension_numbers = #tpu.dot_dimension_numbers<[1], [0], [0], [1], [0, 0, 1, 1], [], []>} : vector<8x32xbf16>, vector<32x8xbf16>, vector<8x8xf32> -> vector<8x8xf32>
    %cst_9 = arith.constant dense<0xFF800000> : vector<8xf32>
    %13 = vector.multi_reduction <maximumf>, %12, %cst_9 [1] : vector<8x8xf32> to vector<8xf32>
    %14 = vector.shape_cast %13 : vector<8xf32> to vector<8x1xf32>
    %15 = vector.broadcast %14 : vector<8x1xf32> to vector<8x8xf32>
    %16 = arith.subf %12, %15 : vector<8x8xf32>
    %17 = math.exp %16 : vector<8x8xf32>
    %cst_10 = arith.constant dense<0.000000e+00> : vector<8xf32>
    %18 = vector.multi_reduction <add>, %17, %cst_10 [1] : vector<8x8xf32> to vector<8xf32>
    %19 = vector.shape_cast %18 : vector<8xf32> to vector<8x1xf32>
    %20 = tpu.reciprocal %19 {approx = true} : vector<8x1xf32> -> vector<8x1xf32>
    %21 = vector.broadcast %20 : vector<8x1xf32> to vector<8x8xf32>
    %22 = arith.mulf %17, %21 : vector<8x8xf32>
    %23 = arith.truncf %22 : vector<8x8xf32> to vector<8x8xbf16>
    %cst_11 = arith.constant dense<0.000000e+00> : vector<8x32xf32>
    %24 = tpu.matmul %23, %10, %cst_11 {dimension_numbers = #tpu.dot_dimension_numbers<[1], [0], [0], [1], [0, 0, 1, 1], [], []>} : vector<8x8xbf16>, vector<8x32xbf16>, vector<8x32xf32> -> vector<8x32xf32>
    %25 = vector.extract_strided_slice %7 {offsets = [0, 32], sizes = [8, 32], strides = [1, 1]} : vector<8x128xbf16> to vector<8x32xbf16>
    %26 = vector.extract_strided_slice %3 {offsets = [0, 32], sizes = [8, 32], strides = [1, 1]} : vector<8x128xbf16> to vector<8x32xbf16>
    %27 = vector.extract_strided_slice %5 {offsets = [0, 32], sizes = [8, 32], strides = [1, 1]} : vector<8x128xbf16> to vector<8x32xbf16>
    %28 = tpu.transpose %26, [1, 0] : vector<8x32xbf16> -> vector<32x8xbf16>
    %cst_12 = arith.constant dense<0.000000e+00> : vector<8x8xf32>
    %29 = tpu.matmul %25, %28, %cst_12 {dimension_numbers = #tpu.dot_dimension_numbers<[1], [0], [0], [1], [0, 0, 1, 1], [], []>} : vector<8x32xbf16>, vector<32x8xbf16>, vector<8x8xf32> -> vector<8x8xf32>
    %cst_13 = arith.constant dense<0xFF800000> : vector<8xf32>
    %30 = vector.multi_reduction <maximumf>, %29, %cst_13 [1] : vector<8x8xf32> to vector<8xf32>
    %31 = vector.shape_cast %30 : vector<8xf32> to vector<8x1xf32>
    %32 = vector.broadcast %31 : vector<8x1xf32> to vector<8x8xf32>
    %33 = arith.subf %29, %32 : vector<8x8xf32>
    %34 = math.exp %33 : vector<8x8xf32>
    %cst_14 = arith.constant dense<0.000000e+00> : vector<8xf32>
    %35 = vector.multi_reduction <add>, %34, %cst_14 [1] : vector<8x8xf32> to vector<8xf32>
    %36 = vector.shape_cast %35 : vector<8xf32> to vector<8x1xf32>
    %37 = tpu.reciprocal %36 {approx = true} : vector<8x1xf32> -> vector<8x1xf32>
    %38 = vector.broadcast %37 : vector<8x1xf32> to vector<8x8xf32>
    %39 = arith.mulf %34, %38 : vector<8x8xf32>
    %40 = arith.truncf %39 : vector<8x8xf32> to vector<8x8xbf16>
    %cst_15 = arith.constant dense<0.000000e+00> : vector<8x32xf32>
    %41 = tpu.matmul %40, %27, %cst_15 {dimension_numbers = #tpu.dot_dimension_numbers<[1], [0], [0], [1], [0, 0, 1, 1], [], []>} : vector<8x8xbf16>, vector<8x32xbf16>, vector<8x32xf32> -> vector<8x32xf32>
    %42 = tpu.concatenate %24, %41 in 1 : vector<8x32xf32>, vector<8x32xf32> -> vector<8x64xf32>
    %43 = arith.truncf %42 : vector<8x64xf32> to vector<8x64xbf16>
    %c0_16 = arith.constant 0 : index
    %c0_17 = arith.constant 0 : index
    %c0_18 = arith.constant 0 : index
    %44 = vector.load %arg5[%c0_16, %c0_17, %c0_18] : memref<1x8x128xbf16, #tpu.memory_space<vmem>>, vector<1x8x64xbf16>
    %45 = vector.shape_cast %44 : vector<1x8x64xbf16> to vector<8x64xbf16>
    %46 = vector.shape_cast %43 : vector<8x64xbf16> to vector<1x8x64xbf16>
    tpu.vector_store %arg5[%c0_16, %c0_17, %c0_18], %46 {strides = array<i32>} : memref<1x8x128xbf16, #tpu.memory_space<vmem>>, vector<1x8x64xbf16>,
    %47 = vector.extract_strided_slice %7 {offsets = [0, 64], sizes = [8, 32], strides = [1, 1]} : vector<8x128xbf16> to vector<8x32xbf16>
    %48 = vector.extract_strided_slice %3 {offsets = [0, 64], sizes = [8, 32], strides = [1, 1]} : vector<8x128xbf16> to vector<8x32xbf16>
    %49 = vector.extract_strided_slice %5 {offsets = [0, 64], sizes = [8, 32], strides = [1, 1]} : vector<8x128xbf16> to vector<8x32xbf16>
    %50 = tpu.transpose %48, [1, 0] : vector<8x32xbf16> -> vector<32x8xbf16>
    %cst_19 = arith.constant dense<0.000000e+00> : vector<8x8xf32>
    %51 = tpu.matmul %47, %50, %cst_19 {dimension_numbers = #tpu.dot_dimension_numbers<[1], [0], [0], [1], [0, 0, 1, 1], [], []>} : vector<8x32xbf16>, vector<32x8xbf16>, vector<8x8xf32> -> vector<8x8xf32>
    %cst_20 = arith.constant dense<0xFF800000> : vector<8xf32>
    %52 = vector.multi_reduction <maximumf>, %51, %cst_20 [1] : vector<8x8xf32> to vector<8xf32>
    %53 = vector.shape_cast %52 : vector<8xf32> to vector<8x1xf32>
    %54 = vector.broadcast %53 : vector<8x1xf32> to vector<8x8xf32>
    %55 = arith.subf %51, %54 : vector<8x8xf32>
    %56 = math.exp %55 : vector<8x8xf32>
    %cst_21 = arith.constant dense<0.000000e+00> : vector<8xf32>
    %57 = vector.multi_reduction <add>, %56, %cst_21 [1] : vector<8x8xf32> to vector<8xf32>
    %58 = vector.shape_cast %57 : vector<8xf32> to vector<8x1xf32>
    %59 = tpu.reciprocal %58 {approx = true} : vector<8x1xf32> -> vector<8x1xf32>
    %60 = vector.broadcast %59 : vector<8x1xf32> to vector<8x8xf32>
    %61 = arith.mulf %56, %60 : vector<8x8xf32>
    %62 = arith.truncf %61 : vector<8x8xf32> to vector<8x8xbf16>
    %cst_22 = arith.constant dense<0.000000e+00> : vector<8x32xf32>
    %63 = tpu.matmul %62, %49, %cst_22 {dimension_numbers = #tpu.dot_dimension_numbers<[1], [0], [0], [1], [0, 0, 1, 1], [], []>} : vector<8x8xbf16>, vector<8x32xbf16>, vector<8x32xf32> -> vector<8x32xf32>
    %64 = vector.extract_strided_slice %7 {offsets = [0, 96], sizes = [8, 32], strides = [1, 1]} : vector<8x128xbf16> to vector<8x32xbf16>
    %65 = vector.extract_strided_slice %3 {offsets = [0, 96], sizes = [8, 32], strides = [1, 1]} : vector<8x128xbf16> to vector<8x32xbf16>
    %66 = vector.extract_strided_slice %5 {offsets = [0, 96], sizes = [8, 32], strides = [1, 1]} : vector<8x128xbf16> to vector<8x32xbf16>
    %67 = tpu.transpose %65, [1, 0] : vector<8x32xbf16> -> vector<32x8xbf16>
    %cst_23 = arith.constant dense<0.000000e+00> : vector<8x8xf32>
    %68 = tpu.matmul %64, %67, %cst_23 {dimension_numbers = #tpu.dot_dimension_numbers<[1], [0], [0], [1], [0, 0, 1, 1], [], []>} : vector<8x32xbf16>, vector<32x8xbf16>, vector<8x8xf32> -> vector<8x8xf32>
    %cst_24 = arith.constant dense<0xFF800000> : vector<8xf32>
    %69 = vector.multi_reduction <maximumf>, %68, %cst_24 [1] : vector<8x8xf32> to vector<8xf32>
    %70 = vector.shape_cast %69 : vector<8xf32> to vector<8x1xf32>
    %71 = vector.broadcast %70 : vector<8x1xf32> to vector<8x8xf32>
    %72 = arith.subf %68, %71 : vector<8x8xf32>
    %73 = math.exp %72 : vector<8x8xf32>
    %cst_25 = arith.constant dense<0.000000e+00> : vector<8xf32>
    %74 = vector.multi_reduction <add>, %73, %cst_25 [1] : vector<8x8xf32> to vector<8xf32>
    %75 = vector.shape_cast %74 : vector<8xf32> to vector<8x1xf32>
    %76 = tpu.reciprocal %75 {approx = true} : vector<8x1xf32> -> vector<8x1xf32>
    %77 = vector.broadcast %76 : vector<8x1xf32> to vector<8x8xf32>
    %78 = arith.mulf %73, %77 : vector<8x8xf32>
    %79 = arith.truncf %78 : vector<8x8xf32> to vector<8x8xbf16>
    %cst_26 = arith.constant dense<0.000000e+00> : vector<8x32xf32>
    %80 = tpu.matmul %79, %66, %cst_26 {dimension_numbers = #tpu.dot_dimension_numbers<[1], [0], [0], [1], [0, 0, 1, 1], [], []>} : vector<8x8xbf16>, vector<8x32xbf16>, vector<8x32xf32> -> vector<8x32xf32>
    %81 = tpu.concatenate %63, %80 in 1 : vector<8x32xf32>, vector<8x32xf32> -> vector<8x64xf32>
    %82 = arith.truncf %81 : vector<8x64xf32> to vector<8x64xbf16>
    %c0_27 = arith.constant 0 : index
    %c0_28 = arith.constant 0 : index
    %c64 = arith.constant 64 : index
    %83 = vector.load %arg5[%c0_27, %c0_28, %c64] : memref<1x8x128xbf16, #tpu.memory_space<vmem>>, vector<1x8x64xbf16>
    %84 = vector.shape_cast %83 : vector<1x8x64xbf16> to vector<8x64xbf16>
    %85 = vector.shape_cast %82 : vector<8x64xbf16> to vector<1x8x64xbf16>
    tpu.vector_store %arg5[%c0_27, %c0_28, %c64], %85 {strides = array<i32>} : memref<1x8x128xbf16, #tpu.memory_space<vmem>>, vector<1x8x64xbf16>,
    return
  }
  func.func @transform_0(%arg0: i32, %arg1: i32) -> (i32, i32, i32) {
    %c0_i32 = arith.constant 0 : i32
    %c0_i32_0 = arith.constant 0 : i32
    return %arg0, %arg1, %c0_i32 : i32, i32, i32
  }
  func.func @transform_1(%arg0: i32, %arg1: i32) -> (i32, i32, i32) {
    %c0_i32 = arith.constant 0 : i32
    %c1_i32 = arith.constant 1 : i32
    %c0_i32_0 = arith.constant 0 : i32
    return %arg0, %c0_i32, %c1_i32 : i32, i32, i32
  }
  func.func @transform_2(%arg0: i32, %arg1: i32) -> (i32, i32, i32) {
    %c0_i32 = arith.constant 0 : i32
    %c2_i32 = arith.constant 2 : i32
    %c0_i32_0 = arith.constant 0 : i32
    return %arg0, %c0_i32, %c2_i32 : i32, i32, i32
  }
  func.func @transform_3(%arg0: i32, %arg1: i32) -> (i32, i32, i32) {
    %c0_i32 = arith.constant 0 : i32
    %c0_i32_0 = arith.constant 0 : i32
    return %arg0, %arg1, %c0_i32 : i32, i32, i32
  }
}

module attributes {stable_mosaic.version = 11 : i64} {
  func.func @_linear_kernel(%arg0: i32, %arg1: i32, %arg2: i32, %arg3: memref<16x128xbf16, #tpu.memory_space<vmem>>, %arg4: memref<128x256xbf16, #tpu.memory_space<vmem>>, %arg5: memref<1x256xf32, #tpu.memory_space<vmem>>, %arg6: memref<16x256xbf16, #tpu.memory_space<vmem>>, %arg7: memref<16x256xf32, #tpu.memory_space<vmem>>) attributes {dimension_semantics = [#tpu.dimension_semantics<parallel>, #tpu.dimension_semantics<parallel>, #tpu.dimension_semantics<arbitrary>], iteration_bounds = array<i64: 1, 1, 1>, scalar_prefetch = 0 : i64, scratch_operands = 1 : i64, tpu.core_type = #tpu.core_type<tc>, window_params = [{transform_indices = @transform_0, window_bounds = array<i64: 16, 128>}, {transform_indices = @transform_1, window_bounds = array<i64: 128, 256>}, {transform_indices = @transform_2, window_bounds = array<i64: 1, 256>}, {transform_indices = @transform_3, window_bounds = array<i64: 16, 256>}]} {
    %c0_i32 = arith.constant 0 : i32
    %0 = arith.cmpi eq, %arg2, %c0_i32 : i32
    %1 = arith.extui %0 : i1 to i32
    %c0_i32_0 = arith.constant 0 : i32
    %2 = arith.cmpi ne, %1, %c0_i32_0 : i32
    scf.if %2 {
      %cst_10 = arith.constant 0.000000e+00 : f32
      %12 = vector.broadcast %cst_10 : f32 to vector<16x256xf32>
      %c0_11 = arith.constant 0 : index
      %c0_12 = arith.constant 0 : index
      %13 = vector.load %arg7[%c0_11, %c0_12] : memref<16x256xf32, #tpu.memory_space<vmem>>, vector<16x256xf32>
      tpu.vector_store %arg7[%c0_11, %c0_12], %12 {strides = array<i32>} : memref<16x256xf32, #tpu.memory_space<vmem>>, vector<16x256xf32>,
    } else {
    }
    %c0 = arith.constant 0 : index
    %c0_1 = arith.constant 0 : index
    %3 = vector.load %arg7[%c0, %c0_1] : memref<16x256xf32, #tpu.memory_space<vmem>>, vector<16x256xf32>
    %c0_2 = arith.constant 0 : index
    %c0_3 = arith.constant 0 : index
    %4 = vector.load %arg3[%c0_2, %c0_3] : memref<16x128xbf16, #tpu.memory_space<vmem>>, vector<16x128xbf16>
    %c0_4 = arith.constant 0 : index
    %c0_5 = arith.constant 0 : index
    %5 = vector.load %arg4[%c0_4, %c0_5] : memref<128x256xbf16, #tpu.memory_space<vmem>>, vector<128x256xbf16>
    %cst = arith.constant dense<0.000000e+00> : vector<16x256xf32>
    %6 = tpu.matmul %4, %5, %cst {dimension_numbers = #tpu.dot_dimension_numbers<[1], [0], [0], [1], [0, 0, 1, 1], [], []>} : vector<16x128xbf16>, vector<128x256xbf16>, vector<16x256xf32> -> vector<16x256xf32>
    %7 = arith.addf %3, %6 : vector<16x256xf32>
    %c0_6 = arith.constant 0 : index
    %c0_7 = arith.constant 0 : index
    %8 = vector.load %arg7[%c0_6, %c0_7] : memref<16x256xf32, #tpu.memory_space<vmem>>, vector<16x256xf32>
    tpu.vector_store %arg7[%c0_6, %c0_7], %7 {strides = array<i32>} : memref<16x256xf32, #tpu.memory_space<vmem>>, vector<16x256xf32>,
    %c0_i32_8 = arith.constant 0 : i32
    %9 = arith.cmpi eq, %arg2, %c0_i32_8 : i32
    %10 = arith.extui %9 : i1 to i32
    %c0_i32_9 = arith.constant 0 : i32
    %11 = arith.cmpi ne, %10, %c0_i32_9 : i32
    scf.if %11 {
      %c0_10 = arith.constant 0 : index
      %c0_11 = arith.constant 0 : index
      %12 = vector.load %arg7[%c0_10, %c0_11] : memref<16x256xf32, #tpu.memory_space<vmem>>, vector<16x256xf32>
      %c0_12 = arith.constant 0 : index
      %c0_13 = arith.constant 0 : index
      %13 = vector.load %arg5[%c0_12, %c0_13] : memref<1x256xf32, #tpu.memory_space<vmem>>, vector<1x256xf32>
      %14 = vector.broadcast %13 : vector<1x256xf32> to vector<16x256xf32>
      %15 = arith.addf %12, %14 : vector<16x256xf32>
      %cst_14 = arith.constant 0.000000e+00 : f32
      %16 = vector.broadcast %cst_14 : f32 to vector<16x256xf32>
      %17 = arith.maximumf %15, %16 : vector<16x256xf32>
      %18 = arith.truncf %17 : vector<16x256xf32> to vector<16x256xbf16>
      %c0_15 = arith.constant 0 : index
      %c0_16 = arith.constant 0 : index
      %19 = vector.load %arg6[%c0_15, %c0_16] : memref<16x256xbf16, #tpu.memory_space<vmem>>, vector<16x256xbf16>
      tpu.vector_store %arg6[%c0_15, %c0_16], %18 {strides = array<i32>} : memref<16x256xbf16, #tpu.memory_space<vmem>>, vector<16x256xbf16>,
    } else {
    }
    return
  }
  func.func @transform_0(%arg0: i32, %arg1: i32, %arg2: i32) -> (i32, i32) {
    %c0_i32 = arith.constant 0 : i32
    return %arg0, %arg2 : i32, i32
  }
  func.func @transform_1(%arg0: i32, %arg1: i32, %arg2: i32) -> (i32, i32) {
    %c0_i32 = arith.constant 0 : i32
    return %arg2, %arg1 : i32, i32
  }
  func.func @transform_2(%arg0: i32, %arg1: i32, %arg2: i32) -> (i32, i32) {
    %c0_i32 = arith.constant 0 : i32
    %c0_i32_0 = arith.constant 0 : i32
    return %c0_i32, %arg1 : i32, i32
  }
  func.func @transform_3(%arg0: i32, %arg1: i32, %arg2: i32) -> (i32, i32) {
    %c0_i32 = arith.constant 0 : i32
    return %arg0, %arg1 : i32, i32
  }
}

module attributes {stable_mosaic.version = 11 : i64} {
  func.func @_linear_kernel(%arg0: i32, %arg1: i32, %arg2: i32, %arg3: memref<16x256xbf16, #tpu.memory_space<vmem>>, %arg4: memref<256x128xbf16, #tpu.memory_space<vmem>>, %arg5: memref<1x128xf32, #tpu.memory_space<vmem>>, %arg6: memref<16x128xbf16, #tpu.memory_space<vmem>>, %arg7: memref<16x128xf32, #tpu.memory_space<vmem>>) attributes {dimension_semantics = [#tpu.dimension_semantics<parallel>, #tpu.dimension_semantics<parallel>, #tpu.dimension_semantics<arbitrary>], iteration_bounds = array<i64: 1, 1, 1>, scalar_prefetch = 0 : i64, scratch_operands = 1 : i64, tpu.core_type = #tpu.core_type<tc>, window_params = [{transform_indices = @transform_0, window_bounds = array<i64: 16, 256>}, {transform_indices = @transform_1, window_bounds = array<i64: 256, 128>}, {transform_indices = @transform_2, window_bounds = array<i64: 1, 128>}, {transform_indices = @transform_3, window_bounds = array<i64: 16, 128>}]} {
    %c0_i32 = arith.constant 0 : i32
    %0 = arith.cmpi eq, %arg2, %c0_i32 : i32
    %1 = arith.extui %0 : i1 to i32
    %c0_i32_0 = arith.constant 0 : i32
    %2 = arith.cmpi ne, %1, %c0_i32_0 : i32
    scf.if %2 {
      %cst_10 = arith.constant 0.000000e+00 : f32
      %12 = vector.broadcast %cst_10 : f32 to vector<16x128xf32>
      %c0_11 = arith.constant 0 : index
      %c0_12 = arith.constant 0 : index
      %13 = vector.load %arg7[%c0_11, %c0_12] : memref<16x128xf32, #tpu.memory_space<vmem>>, vector<16x128xf32>
      tpu.vector_store %arg7[%c0_11, %c0_12], %12 {strides = array<i32>} : memref<16x128xf32, #tpu.memory_space<vmem>>, vector<16x128xf32>,
    } else {
    }
    %c0 = arith.constant 0 : index
    %c0_1 = arith.constant 0 : index
    %3 = vector.load %arg7[%c0, %c0_1] : memref<16x128xf32, #tpu.memory_space<vmem>>, vector<16x128xf32>
    %c0_2 = arith.constant 0 : index
    %c0_3 = arith.constant 0 : index
    %4 = vector.load %arg3[%c0_2, %c0_3] : memref<16x256xbf16, #tpu.memory_space<vmem>>, vector<16x256xbf16>
    %c0_4 = arith.constant 0 : index
    %c0_5 = arith.constant 0 : index
    %5 = vector.load %arg4[%c0_4, %c0_5] : memref<256x128xbf16, #tpu.memory_space<vmem>>, vector<256x128xbf16>
    %cst = arith.constant dense<0.000000e+00> : vector<16x128xf32>
    %6 = tpu.matmul %4, %5, %cst {dimension_numbers = #tpu.dot_dimension_numbers<[1], [0], [0], [1], [0, 0, 1, 1], [], []>} : vector<16x256xbf16>, vector<256x128xbf16>, vector<16x128xf32> -> vector<16x128xf32>
    %7 = arith.addf %3, %6 : vector<16x128xf32>
    %c0_6 = arith.constant 0 : index
    %c0_7 = arith.constant 0 : index
    %8 = vector.load %arg7[%c0_6, %c0_7] : memref<16x128xf32, #tpu.memory_space<vmem>>, vector<16x128xf32>
    tpu.vector_store %arg7[%c0_6, %c0_7], %7 {strides = array<i32>} : memref<16x128xf32, #tpu.memory_space<vmem>>, vector<16x128xf32>,
    %c0_i32_8 = arith.constant 0 : i32
    %9 = arith.cmpi eq, %arg2, %c0_i32_8 : i32
    %10 = arith.extui %9 : i1 to i32
    %c0_i32_9 = arith.constant 0 : i32
    %11 = arith.cmpi ne, %10, %c0_i32_9 : i32
    scf.if %11 {
      %c0_10 = arith.constant 0 : index
      %c0_11 = arith.constant 0 : index
      %12 = vector.load %arg7[%c0_10, %c0_11] : memref<16x128xf32, #tpu.memory_space<vmem>>, vector<16x128xf32>
      %c0_12 = arith.constant 0 : index
      %c0_13 = arith.constant 0 : index
      %13 = vector.load %arg5[%c0_12, %c0_13] : memref<1x128xf32, #tpu.memory_space<vmem>>, vector<1x128xf32>
      %14 = vector.broadcast %13 : vector<1x128xf32> to vector<16x128xf32>
      %15 = arith.addf %12, %14 : vector<16x128xf32>
      %16 = arith.truncf %15 : vector<16x128xf32> to vector<16x128xbf16>
      %c0_14 = arith.constant 0 : index
      %c0_15 = arith.constant 0 : index
      %17 = vector.load %arg6[%c0_14, %c0_15] : memref<16x128xbf16, #tpu.memory_space<vmem>>, vector<16x128xbf16>
      tpu.vector_store %arg6[%c0_14, %c0_15], %16 {strides = array<i32>} : memref<16x128xbf16, #tpu.memory_space<vmem>>, vector<16x128xbf16>,
    } else {
    }
    return
  }
  func.func @transform_0(%arg0: i32, %arg1: i32, %arg2: i32) -> (i32, i32) {
    %c0_i32 = arith.constant 0 : i32
    return %arg0, %arg2 : i32, i32
  }
  func.func @transform_1(%arg0: i32, %arg1: i32, %arg2: i32) -> (i32, i32) {
    %c0_i32 = arith.constant 0 : i32
    return %arg2, %arg1 : i32, i32
  }
  func.func @transform_2(%arg0: i32, %arg1: i32, %arg2: i32) -> (i32, i32) {
    %c0_i32 = arith.constant 0 : i32
    %c0_i32_0 = arith.constant 0 : i32
    return %c0_i32, %arg1 : i32, i32
  }
  func.func @transform_3(%arg0: i32, %arg1: i32, %arg2: i32) -> (i32, i32) {
    %c0_i32 = arith.constant 0 : i32
    return %arg0, %arg1 : i32, i32
  }
}

module attributes {stable_mosaic.version = 11 : i64} {
  func.func @_linear_kernel(%arg0: i32, %arg1: i32, %arg2: i32, %arg3: memref<16x128xbf16, #tpu.memory_space<vmem>>, %arg4: memref<128x512xbf16, #tpu.memory_space<vmem>>, %arg5: memref<1x512xf32, #tpu.memory_space<vmem>>, %arg6: memref<16x512xf32, #tpu.memory_space<vmem>>, %arg7: memref<16x512xf32, #tpu.memory_space<vmem>>) attributes {dimension_semantics = [#tpu.dimension_semantics<parallel>, #tpu.dimension_semantics<parallel>, #tpu.dimension_semantics<arbitrary>], iteration_bounds = array<i64: 1, 1, 1>, scalar_prefetch = 0 : i64, scratch_operands = 1 : i64, tpu.core_type = #tpu.core_type<tc>, window_params = [{transform_indices = @transform_0, window_bounds = array<i64: 16, 128>}, {transform_indices = @transform_1, window_bounds = array<i64: 128, 512>}, {transform_indices = @transform_2, window_bounds = array<i64: 1, 512>}, {transform_indices = @transform_3, window_bounds = array<i64: 16, 512>}]} {
    %c0_i32 = arith.constant 0 : i32
    %0 = arith.cmpi eq, %arg2, %c0_i32 : i32
    %1 = arith.extui %0 : i1 to i32
    %c0_i32_0 = arith.constant 0 : i32
    %2 = arith.cmpi ne, %1, %c0_i32_0 : i32
    scf.if %2 {
      %cst_10 = arith.constant 0.000000e+00 : f32
      %12 = vector.broadcast %cst_10 : f32 to vector<16x512xf32>
      %c0_11 = arith.constant 0 : index
      %c0_12 = arith.constant 0 : index
      %13 = vector.load %arg7[%c0_11, %c0_12] : memref<16x512xf32, #tpu.memory_space<vmem>>, vector<16x512xf32>
      tpu.vector_store %arg7[%c0_11, %c0_12], %12 {strides = array<i32>} : memref<16x512xf32, #tpu.memory_space<vmem>>, vector<16x512xf32>,
    } else {
    }
    %c0 = arith.constant 0 : index
    %c0_1 = arith.constant 0 : index
    %3 = vector.load %arg7[%c0, %c0_1] : memref<16x512xf32, #tpu.memory_space<vmem>>, vector<16x512xf32>
    %c0_2 = arith.constant 0 : index
    %c0_3 = arith.constant 0 : index
    %4 = vector.load %arg3[%c0_2, %c0_3] : memref<16x128xbf16, #tpu.memory_space<vmem>>, vector<16x128xbf16>
    %c0_4 = arith.constant 0 : index
    %c0_5 = arith.constant 0 : index
    %5 = vector.load %arg4[%c0_4, %c0_5] : memref<128x512xbf16, #tpu.memory_space<vmem>>, vector<128x512xbf16>
    %cst = arith.constant dense<0.000000e+00> : vector<16x512xf32>
    %6 = tpu.matmul %4, %5, %cst {dimension_numbers = #tpu.dot_dimension_numbers<[1], [0], [0], [1], [0, 0, 1, 1], [], []>} : vector<16x128xbf16>, vector<128x512xbf16>, vector<16x512xf32> -> vector<16x512xf32>
    %7 = arith.addf %3, %6 : vector<16x512xf32>
    %c0_6 = arith.constant 0 : index
    %c0_7 = arith.constant 0 : index
    %8 = vector.load %arg7[%c0_6, %c0_7] : memref<16x512xf32, #tpu.memory_space<vmem>>, vector<16x512xf32>
    tpu.vector_store %arg7[%c0_6, %c0_7], %7 {strides = array<i32>} : memref<16x512xf32, #tpu.memory_space<vmem>>, vector<16x512xf32>,
    %c0_i32_8 = arith.constant 0 : i32
    %9 = arith.cmpi eq, %arg2, %c0_i32_8 : i32
    %10 = arith.extui %9 : i1 to i32
    %c0_i32_9 = arith.constant 0 : i32
    %11 = arith.cmpi ne, %10, %c0_i32_9 : i32
    scf.if %11 {
      %c0_10 = arith.constant 0 : index
      %c0_11 = arith.constant 0 : index
      %12 = vector.load %arg7[%c0_10, %c0_11] : memref<16x512xf32, #tpu.memory_space<vmem>>, vector<16x512xf32>
      %c0_12 = arith.constant 0 : index
      %c0_13 = arith.constant 0 : index
      %13 = vector.load %arg5[%c0_12, %c0_13] : memref<1x512xf32, #tpu.memory_space<vmem>>, vector<1x512xf32>
      %14 = vector.broadcast %13 : vector<1x512xf32> to vector<16x512xf32>
      %15 = arith.addf %12, %14 : vector<16x512xf32>
      %c0_14 = arith.constant 0 : index
      %c0_15 = arith.constant 0 : index
      %16 = vector.load %arg6[%c0_14, %c0_15] : memref<16x512xf32, #tpu.memory_space<vmem>>, vector<16x512xf32>
      tpu.vector_store %arg6[%c0_14, %c0_15], %15 {strides = array<i32>} : memref<16x512xf32, #tpu.memory_space<vmem>>, vector<16x512xf32>,
    } else {
    }
    return
  }
  func.func @transform_0(%arg0: i32, %arg1: i32, %arg2: i32) -> (i32, i32) {
    %c0_i32 = arith.constant 0 : i32
    return %arg0, %arg2 : i32, i32
  }
  func.func @transform_1(%arg0: i32, %arg1: i32, %arg2: i32) -> (i32, i32) {
    %c0_i32 = arith.constant 0 : i32
    return %arg2, %arg1 : i32, i32
  }
  func.func @transform_2(%arg0: i32, %arg1: i32, %arg2: i32) -> (i32, i32) {
    %c0_i32 = arith.constant 0 : i32
    %c0_i32_0 = arith.constant 0 : i32
    return %c0_i32, %arg1 : i32, i32
  }
  func.func @transform_3(%arg0: i32, %arg1: i32, %arg2: i32) -> (i32, i32) {
    %c0_i32 = arith.constant 0 : i32
    return %arg0, %arg1 : i32, i32
  }
}

module attributes {stable_mosaic.version = 11 : i64} {
  func.func @_linear_kernel(%arg0: i32, %arg1: i32, %arg2: i32, %arg3: memref<16x128xbf16, #tpu.memory_space<vmem>>, %arg4: memref<128x128xbf16, #tpu.memory_space<vmem>>, %arg5: memref<1x128xf32, #tpu.memory_space<vmem>>, %arg6: memref<16x128xbf16, #tpu.memory_space<vmem>>, %arg7: memref<16x128xf32, #tpu.memory_space<vmem>>) attributes {dimension_semantics = [#tpu.dimension_semantics<parallel>, #tpu.dimension_semantics<parallel>, #tpu.dimension_semantics<arbitrary>], iteration_bounds = array<i64: 1, 3, 1>, scalar_prefetch = 0 : i64, scratch_operands = 1 : i64, tpu.core_type = #tpu.core_type<tc>, window_params = [{transform_indices = @transform_0, window_bounds = array<i64: 16, 128>}, {transform_indices = @transform_1, window_bounds = array<i64: 128, 128>}, {transform_indices = @transform_2, window_bounds = array<i64: 1, 128>}, {transform_indices = @transform_3, window_bounds = array<i64: 16, 128>}]} {
    %c0_i32 = arith.constant 0 : i32
    %0 = arith.cmpi eq, %arg2, %c0_i32 : i32
    %1 = arith.extui %0 : i1 to i32
    %c0_i32_0 = arith.constant 0 : i32
    %2 = arith.cmpi ne, %1, %c0_i32_0 : i32
    scf.if %2 {
      %cst_10 = arith.constant 0.000000e+00 : f32
      %12 = vector.broadcast %cst_10 : f32 to vector<16x128xf32>
      %c0_11 = arith.constant 0 : index
      %c0_12 = arith.constant 0 : index
      %13 = vector.load %arg7[%c0_11, %c0_12] : memref<16x128xf32, #tpu.memory_space<vmem>>, vector<16x128xf32>
      tpu.vector_store %arg7[%c0_11, %c0_12], %12 {strides = array<i32>} : memref<16x128xf32, #tpu.memory_space<vmem>>, vector<16x128xf32>,
    } else {
    }
    %c0 = arith.constant 0 : index
    %c0_1 = arith.constant 0 : index
    %3 = vector.load %arg7[%c0, %c0_1] : memref<16x128xf32, #tpu.memory_space<vmem>>, vector<16x128xf32>
    %c0_2 = arith.constant 0 : index
    %c0_3 = arith.constant 0 : index
    %4 = vector.load %arg3[%c0_2, %c0_3] : memref<16x128xbf16, #tpu.memory_space<vmem>>, vector<16x128xbf16>
    %c0_4 = arith.constant 0 : index
    %c0_5 = arith.constant 0 : index
    %5 = vector.load %arg4[%c0_4, %c0_5] : memref<128x128xbf16, #tpu.memory_space<vmem>>, vector<128x128xbf16>
    %cst = arith.constant dense<0.000000e+00> : vector<16x128xf32>
    %6 = tpu.matmul %4, %5, %cst {dimension_numbers = #tpu.dot_dimension_numbers<[1], [0], [0], [1], [0, 0, 1, 1], [], []>} : vector<16x128xbf16>, vector<128x128xbf16>, vector<16x128xf32> -> vector<16x128xf32>
    %7 = arith.addf %3, %6 : vector<16x128xf32>
    %c0_6 = arith.constant 0 : index
    %c0_7 = arith.constant 0 : index
    %8 = vector.load %arg7[%c0_6, %c0_7] : memref<16x128xf32, #tpu.memory_space<vmem>>, vector<16x128xf32>
    tpu.vector_store %arg7[%c0_6, %c0_7], %7 {strides = array<i32>} : memref<16x128xf32, #tpu.memory_space<vmem>>, vector<16x128xf32>,
    %c0_i32_8 = arith.constant 0 : i32
    %9 = arith.cmpi eq, %arg2, %c0_i32_8 : i32
    %10 = arith.extui %9 : i1 to i32
    %c0_i32_9 = arith.constant 0 : i32
    %11 = arith.cmpi ne, %10, %c0_i32_9 : i32
    scf.if %11 {
      %c0_10 = arith.constant 0 : index
      %c0_11 = arith.constant 0 : index
      %12 = vector.load %arg7[%c0_10, %c0_11] : memref<16x128xf32, #tpu.memory_space<vmem>>, vector<16x128xf32>
      %c0_12 = arith.constant 0 : index
      %c0_13 = arith.constant 0 : index
      %13 = vector.load %arg5[%c0_12, %c0_13] : memref<1x128xf32, #tpu.memory_space<vmem>>, vector<1x128xf32>
      %14 = vector.broadcast %13 : vector<1x128xf32> to vector<16x128xf32>
      %15 = arith.addf %12, %14 : vector<16x128xf32>
      %16 = arith.truncf %15 : vector<16x128xf32> to vector<16x128xbf16>
      %c0_14 = arith.constant 0 : index
      %c0_15 = arith.constant 0 : index
      %17 = vector.load %arg6[%c0_14, %c0_15] : memref<16x128xbf16, #tpu.memory_space<vmem>>, vector<16x128xbf16>
      tpu.vector_store %arg6[%c0_14, %c0_15], %16 {strides = array<i32>} : memref<16x128xbf16, #tpu.memory_space<vmem>>, vector<16x128xbf16>,
    } else {
    }
    return
  }
  func.func @transform_0(%arg0: i32, %arg1: i32, %arg2: i32) -> (i32, i32) {
    %c0_i32 = arith.constant 0 : i32
    return %arg0, %arg2 : i32, i32
  }
  func.func @transform_1(%arg0: i32, %arg1: i32, %arg2: i32) -> (i32, i32) {
    %c0_i32 = arith.constant 0 : i32
    return %arg2, %arg1 : i32, i32
  }
  func.func @transform_2(%arg0: i32, %arg1: i32, %arg2: i32) -> (i32, i32) {
    %c0_i32 = arith.constant 0 : i32
    %c0_i32_0 = arith.constant 0 : i32
    return %c0_i32, %arg1 : i32, i32
  }
  func.func @transform_3(%arg0: i32, %arg1: i32, %arg2: i32) -> (i32, i32) {
    %c0_i32 = arith.constant 0 : i32
    return %arg0, %arg1 : i32, i32
  }
}

</mosaic_0001>

<bundles_post_ra>
// kernel: gpt2_small_forward.17
= control target key start
LH: loop header
LB: loop body
LE: loop exit
PB: predicated region body
PF: predicated region fallthrough
CT: control target
= control target key end

     0   :  { %v227_v0 = vmov 0.0   ;;  %vm228_vm0 = vmmov 0   ;;  %s282_s1 = inlined_call_operand.vmem [shape: bf16[128,128], index: 1, kind: input, shape index: {}]   ;;  %s283_s0 = inlined_call_operand.vmem [shape: bf16[16,128], index: 0, kind: input, shape index: {}]   ;;  %s284_s2 = inlined_call_operand.vmem [shape: f32[1,128], index: 2, kind: input, shape index: {}]   ;;  %s285_s3 = inlined_call_operand.vmem [shape: bf16[16,128], index: 3, kind: output, shape index: {}]  }
   0x1   :  { %196 = vmatprep.subr.bf16.mxu0 %v227_v0  ;;  %v218_v1 = vld [vmem:[%s282_s1 + $0x38] sm:$0xff]   ;;  %212 = vmatprep.mubr.msk.bf16.mxu0 %vm228_vm0, %v227_v0  ;;  %v219_v2 = vld [vmem:[%s282_s1 + $0x30] sm:$0xff]   ;;  %v220_v3 = vld [vmem:[%s282_s1 + $0x28] sm:$0xff]  }
   0x2   :  { %197 = vmatpush3.bf16.msra.mxu0 %v218_v1  ;;  %v221_v4 = vld [vmem:[%s282_s1 + $0x20] sm:$0xff]   ;;  %v222_v5 = vld [vmem:[%s282_s1 + $0x18] sm:$0xff]   ;;  %v223_v6 = vld [vmem:[%s282_s1 + $0x10] sm:$0xff]  }
   0x3   :  { %198 = vmatprep.subr.bf16.mxu0 %v227_v0  ;;  %v224_v7 = vld [vmem:[%s282_s1 + $0x8] sm:$0xff]   ;;  %v225_v8 = vld [vmem:[%s282_s1] sm:$0xff]  }
   0x4   :  { %v226_v9 = vld [vmem:[%s283_s0] sm:$0xff]  }
   0x5   :  { %v177_v11 = vld [vmem:[%s284_s2] ss:$0 sm:$0xff] }
   0x6   :  { %199 = vmatpush3.bf16.msra.mxu0 %v219_v2 }
   0x7   :  { %200 = vmatprep.subr.bf16.mxu0 %v227_v0 }
   0xa   :  { %201 = vmatpush3.bf16.msra.mxu0 %v220_v3 }
   0xb   :  { %202 = vmatprep.subr.bf16.mxu0 %v227_v0 }
   0xe   :  { %203 = vmatpush3.bf16.msra.mxu0 %v221_v4 }
   0xf   :  { %204 = vmatprep.subr.bf16.mxu0 %v227_v0 }
  0x12   :  { %205 = vmatpush3.bf16.msra.mxu0 %v222_v5 }
  0x13   :  { %206 = vmatprep.subr.bf16.mxu0 %v227_v0 }
  0x16   :  { %207 = vmatpush3.bf16.msra.mxu0 %v223_v6 }
  0x17   :  { %208 = vmatprep.subr.bf16.mxu0 %v227_v0 }
  0x1a   :  { %209 = vmatpush3.bf16.msra.mxu0 %v224_v7 }
  0x1b   :  { %210 = vmatprep.subr.bf16.mxu0 %v227_v0 }
  0x1e   :  { %211 = vmatpush3.bf16.msra.mxu0 %v225_v8 }
  0x21   :  { %213 = vmatmul.mubr.bf16.vlgmr.msra.gmra.mxu0 %v226_v9 }
  0xe1   :  { %v129_v10 = vpop.f32.mrf.mxu0 }
  0xe2   :  { %v152_v14 = vadd.f32 %v177_v11, %v129_v10 }
  0xe3   :  { %v214_v12 = vpop.f32.mrf.mxu0 }
  0xe5   :  { %v132_v13 = vpop.f32.mrf.mxu0 }
  0xe6   :  { %v153_v15 = vadd.f32 %v177_v11, %v132_v13 }
  0xe7   :  { %v215_v16 = vpop.f32.mrf.mxu0 }
  0xe8   :  { %v185_v17 = vpack.c.bf16 %v153_v15, %v152_v14 }
  0xea   :  { %186 = vst [vmem:[%s285_s3] sm:$0xff] %v185_v17  }

// kernel: gpt2_small_forward.15
= control target key start
LH: loop header
LB: loop body
LE: loop exit
PB: predicated region body
PF: predicated region fallthrough
CT: control target
= control target key end

     0   :  { %8 = vsyncpa [#allocation4], 0  ;;  %s923_s0 = inlined_call_operand.vmem [shape: bf16[16,128], index: 0, kind: input, shape index: {}]   ;;  %s924_s1 = inlined_call_operand.hbm [shape: bf16[128,384], index: 1, kind: input, shape index: {}]   ;;  %s925_s2 = inlined_call_operand.vmem [shape: f32[1,384], index: 2, kind: input, shape index: {}]   ;;  %s926_s3 = inlined_call_operand.vmem [shape: bf16[16,384], index: 3, kind: output, shape index: {}]  }
   0x1   :  { %10 = vsyncpa [#allocation4 + $0x1], 0  ;;  %s807_s12 = smov 0   ;;  %s809_s13 = smov 0  }
   0x2   :  { %s811_s14 = smov 0   ;;  %s813_s15 = smov 0  }
   0x3   :  { %s815_s16 = smov 0   ;;  %s817_s17 = smov 0  }
   0x4 LB: > { %s570_s18 = sadd.s32 4294967295, %s779_s17   ;;  %s31_s19 = sadd.s32 1, %s775_s16  ;;  %s779_s17 = sphi %s817_s17, %s16_s17   ;;  %s775_s16 = sphi %s815_s16, %s935_s16   ;;  %s771_s15 = sphi %s813_s15, %s934_s15   ;;  %s767_s14 = sphi %s811_s14, %s933_s14   ;;  %s763_s13 = sphi %s809_s13, %s932_s13   ;;  %s759_s12 = sphi %s807_s12, %s931_s12  }
   0x5   : > { %p33_p0 = scmp.ge.s32.totalorder %s31_s19, 3  ;;  %s72_s20 = sadd.s32 1, %s767_s14 }
   0x6   : > { %p79_p1 = scmp.ne.s32.totalorder %s767_s14, %s763_s13  ;;  %p80_p2 = scmp.eq.s32.totalorder %s779_s17, 0 }
   0x7   : > { %s937_s19 = smov (%p33_p0, %s31_s19), 0  ;;  %p85_p4 = scmp.ne.s32.totalorder %s763_s13, %s759_s12 }
   0x8   : > { %p843_p3 = por %p80_p2, %p79_p1  ;;  %s68_s22 = ssub.s32 %s775_s16, %s937_s19 }
   0x9   : > { %p86_p5 = scmp.eq.s32.totalorder %s570_s18, 0  ;;  %p70_p6 = scmp.eq.s32.totalorder %s68_s22, 0 }
   0xa   : > { %p137_p7 = scmp.eq.s32.totalorder %s570_s18, 2  ;;  %p638_p10 = scmp.lt.s32.totalorder %s779_s17, 3 }
   0xb   : > { %p850_p8 = por %p86_p5, %p85_p4  ;;  %s175_s26 = sand.u32 1, %s767_s14  }
   0xc   : > { %s855_s24 = scalar_select %p70_p6, %s767_s14, %s72_s20  }
   0xd   : > { %p857_p9 = por %p137_p7, %p79_p1  ;;  %s576_s27 = sshll.u32 %s775_s16, 6 }
   0xe   : > { %s575_s28 = sshll.u32 %s175_s26, 6  ;;  %s187_s4 = scalar_lea.hbm %s924_s1, %s576_s27 }
   0xf   : > { %s179_s5 = scalar_lea.vmem [#allocation3], %s575_s28  ;;  %p869_p11 = pnand %p638_p10, %p843_p3 }
  0x10   : > { %s188_s6 = sshll.u32 %s179_s5, 4  ;;  %p577_p12 = scmp.ge.s32.totalorder %s779_s17, 1  ;;  %s189_s6 = int_to_ptr.vmem [resolvable:$true] %s188_s6 }
  0x11   : > { %s176_s8 = scalar_lea.sflag [#allocation4], %s175_s26  ;;  %p703_p13 = pneg %p869_p11 }
  0x12   : > { %s714_s9 = scalar_lea.vmem %s189_s6, 1024  ;;  %s781_s10 = smov [#allocation3]  }
  0x13   : > { %p715_p0 = scmp.ne.s32.totalorder %s189_s6, %s714_s9  ;;  %s719_s11 = sshll.u32 %s781_s10, 4  ;;  %s720_s11 = int_to_ptr.vmem [resolvable:$false] %s719_s11 }
  0x14   : > { %s721_s12 = scalar_lea.vmem %s720_s11, 2048  ;;  %p722_p4 = scmp.lt.s32.totalorder %s189_s6, %s720_s11 }
  0x15   : > { %p717_p1 = pnand %p715_p0, %p703_p13  ;;  %p723_p5 = scmp.lt.s32.totalorder %s721_s12, %s714_s9 }
  0x17   : > { %p718_p2 = pneg %p717_p1  ;;  %p724_p3 = por %p723_p5, %p722_p4 }
  0x19   : > { %p725_p6 = pnand %p724_p3, %p718_p2 }
  0x1b   : > { %728 = shalt.err (!%p725_p6)
}
  0x1c   : > { %s782_s18 = smov 192   ;;  %s783_s20 = smov 64  }
  0x1d   : > { %s784_s21 = smov 4   ;;  %p202_p7 = scmp.lt.s32.totalorder %s779_s17, 4 }
  0x1e   : > { %637 = dma.hbm_to_vmem [thread:$0]  (!%p869_p11), %s187_s4, 1024, %s189_s6, %s176_s8, %s782_s18, %s783_s20, %s784_s21  }
  0x1f   : > { %p203_p10 = pnand %p577_p12, %p202_p7 }
  0x20   : > { %s882_s22 = sand.u32 (!%p203_p10), 1, %s763_s13  }
  0x21   : > { %206 = sbr.rel (%p203_p10) target bundleno = 282 (0x11a), region = 32  ;;  %s578_s26 = sshll.u32 (!%p203_p10), %s882_s22, 6 }
  0x22   : > { %s209_s27 = scalar_lea.sflag (!%p203_p10), [#allocation4], %s882_s22  ;;  %s212_s28 = scalar_lea.vmem (!%p203_p10), [#allocation3], %s578_s26 }
  0x26   : > { %754 = dma.done.wait (%p850_p8), %s209_s27, 1024  }
  0x27   : > { %756 = vsyncadd (%p850_p8), %s209_s27, 4294966272  ;;  %v785_v0 = vmov 0.0   ;;  %vm786_vm0 = vmmov 0   ;;  %v692_v1 = vld [vmem:[%s212_s28 + $0x38] sm:$0xff]   ;;  %v693_v2 = vld [vmem:[%s212_s28 + $0x30] sm:$0xff]   ;;  %p255_p8 = scmp.lt.s32.totalorder %s771_s15, 2 }
  0x28   : > { %612 = vmatprep.subr.bf16.mxu0 %v785_v0  ;;  %628 = vmatprep.mubr.msk.bf16.mxu0 %vm786_vm0, %v785_v0  ;;  %v694_v3 = vld [vmem:[%s212_s28 + $0x28] sm:$0xff]   ;;  %v695_v4 = vld [vmem:[%s212_s28 + $0x20] sm:$0xff]   ;;  %v696_v5 = vld [vmem:[%s212_s28 + $0x18] sm:$0xff]   ;;  %s579_s7 = sshll.u32 %s882_s22, 3  ;;  %s593_s9 = sshll.u32 (%p857_p9), %s771_s15, 2 }
  0x29   : > { %613 = vmatpush3.bf16.msra.mxu0 %v692_v1  ;;  %v697_v6 = vld [vmem:[%s212_s28 + $0x10] sm:$0xff]   ;;  %v698_v7 = vld [vmem:[%s212_s28 + $0x8] sm:$0xff]   ;;  %v699_v8 = vld [vmem:[%s212_s28] sm:$0xff]   ;;  %s256_s30 = scalar_select %p255_p8, %s771_s15, 2 }
  0x2a   : > { %614 = vmatprep.subr.bf16.mxu0 %v785_v0  ;;  %v700_v9 = vld [vmem:[%s923_s0] sm:$0xff]   ;;  %s244_s8 = scalar_lea.vmem [#allocation5], %s579_s7  ;;  %s420_s12 = scalar_lea.vmem (%p857_p9), %s926_s3, %s593_s9 }
  0x2b   : > { %s257_s6 = scalar_lea.vmem %s925_s2, %s256_s30 }
  0x2c   : > { %v589_v11 = vld [vmem:[%s257_s6] ss:$0 sm:$0xff] }
  0x2d   : > { %615 = vmatpush3.bf16.msra.mxu0 %v693_v2 }
  0x2e   : > { %616 = vmatprep.subr.bf16.mxu0 %v785_v0 }
  0x31   : > { %617 = vmatpush3.bf16.msra.mxu0 %v694_v3 }
  0x32   : > { %618 = vmatprep.subr.bf16.mxu0 %v785_v0 }
  0x35   : > { %619 = vmatpush3.bf16.msra.mxu0 %v695_v4 }
  0x36   : > { %620 = vmatprep.subr.bf16.mxu0 %v785_v0 }
  0x39   : > { %621 = vmatpush3.bf16.msra.mxu0 %v696_v5 }
  0x3a   : > { %622 = vmatprep.subr.bf16.mxu0 %v785_v0 }
  0x3d   : > { %623 = vmatpush3.bf16.msra.mxu0 %v697_v6 }
  0x3e   : > { %624 = vmatprep.subr.bf16.mxu0 %v785_v0 }
  0x41   : > { %625 = vmatpush3.bf16.msra.mxu0 %v698_v7 }
  0x42   : > { %626 = vmatprep.subr.bf16.mxu0 %v785_v0 }
  0x45   : > { %627 = vmatpush3.bf16.msra.mxu0 %v699_v8 }
  0x48   : > { %629 = vmatmul.mubr.bf16.vlgmr.msra.gmra.mxu0 %v700_v9 }
 0x108   : > { %v374_v10 = vpop.f32.mrf.mxu0 }
 0x109   : > { %v397_v14 = vadd.f32 %v589_v11, %v374_v10 }
 0x10a   : > { %v630_v12 = vpop.f32.mrf.mxu0 }
 0x10c   : > { %v377_v13 = vpop.f32.mrf.mxu0 }
 0x10d   : > { %v398_v15 = vadd.f32 %v589_v11, %v377_v13  ;;  %415 = sbr.rel (!%p857_p9) target bundleno = 282 (0x11a), region = 48 }
 0x10e   : > { %v631_v16 = vpop.f32.mrf.mxu0 }
 0x10f   : > { %v601_v17 = vpack.c.bf16 %v398_v15, %v397_v14 }
 0x111   : > { %602 = vst [vmem:[%s244_s8] sm:$0xff] %v601_v17  }
 0x118   : > { %v437_v18 = vld [vmem:[%s244_s8] sm:$0xf]  ;;  %v439_v19 = vld [vmem:[%s244_s8 + $0x4] sm:$0xf] }
 0x119   : > { %438 = vst [vmem:[%s420_s12] sm:$0xf] %v437_v18  ;;  %440 = vst [vmem:[%s420_s12 + $0xc] sm:$0xf] %v439_v19 }
 0x11a PF: > { %s16_s17 = sadd.s32 1, %s779_s17   ;;  %s931_s12 = smov %s763_s13 }
 0x11b   : > { %p13_p11 = scmp.ge.s32.totalorder %s16_s17, 5   ;;  %s932_s13 = smov %s767_s14 }
 0x11c   : > { %s933_s14 = smov %s855_s24  ;;  %s934_s15 = smov %s775_s16 }
 0x11d   : > { %s935_s16 = smov %s937_s19  ;;  %15 = sbr.rel (!%p13_p11) target bundleno = 4 (0x4), region = 127 }
 0x122   :  { %478 = vsyncpa [#allocation4], 1 }
 0x123   :  { %480 = vsyncpa [#allocation4 + $0x1], 1 }

// kernel: gpt2_small_forward.18
= control target key start
LH: loop header
LB: loop body
LE: loop exit
PB: predicated region body
PF: predicated region fallthrough
CT: control target
= control target key end

     0   :  { %s145_s0 = inlined_call_operand.vmem [shape: bf16[16,128], index: 0, kind: input, shape index: {}]   ;;  %s146_s1 = inlined_call_operand.vmem [shape: bf16[16,128], index: 1, kind: input, shape index: {}]   ;;  %s147_s2 = inlined_call_operand.vmem [shape: f32[1,128], index: 2, kind: input, shape index: {}]   ;;  %s148_s3 = inlined_call_operand.vmem [shape: f32[1,128], index: 3, kind: input, shape index: {}]   ;;  %s149_s4 = inlined_call_operand.vmem [shape: bf16[16,128], index: 4, kind: output, shape index: {}]  }
   0x1   :  { %v89_v0 = vld [vmem:[%s145_s0] sm:$0xff]  }
   0x2   :  { %v93_v1 = vld [vmem:[%s146_s1] sm:$0xff]   ;;  %v90_v2 = vunpack.c.l.bf16 %v89_v0  ;;  %v91_v4 = vunpack.c.h.bf16 %v89_v0 }
   0x3   :  { %v94_v3 = vunpack.c.l.bf16 %v93_v1  ;;  %v95_v5 = vunpack.c.h.bf16 %v93_v1  ;;  %v82_v24 = vld [vmem:[%s147_s2] ss:$0 sm:$0xff] }
   0x4   :  { %v83_v28 = vld [vmem:[%s148_s3] ss:$0 sm:$0xff] }
   0x5   :  { %v25_v6 = vadd.f32 %v94_v3, %v90_v2  ;;  %v26_v7 = vadd.f32 %v95_v5, %v91_v4 }
   0x7   :  { %27 = vadd.xlane.f32.xlu0 %v25_v6 }
   0xb   :  { %29 = vadd.xlane.f32.xlu0 %v26_v7 }
  0x90   :  { %v28_v8 = vpop.xlane.xlu0 %27 }
  0x91   :  { %v32_v9 = vmul.f32 0.0078125, %v28_v8 }
  0x93   :  { %v34_v10 = vsub.f32 %v25_v6, %v32_v9 }
  0x94   :  { %v30_v11 = vpop.xlane.xlu0 %29 }
  0x95   :  { %v33_v12 = vmul.f32 0.0078125, %v30_v11  ;;  %v36_v13 = vmul.f32 %v34_v10, %v34_v10 }
  0x97   :  { %v35_v14 = vsub.f32 %v26_v7, %v33_v12  ;;  %38 = vadd.xlane.f32.xlu1 %v36_v13 }
  0x99   :  { %v37_v15 = vmul.f32 %v35_v14, %v35_v14 }
  0x9b   :  { %40 = vadd.xlane.f32.xlu1 %v37_v15 }
 0x120   :  { %v39_v16 = vpop.xlane.xlu1 %38 }
 0x121   :  { %v42_v17 = vmul.f32 0.0078125, %v39_v16 }
 0x123   :  { %v44_v18 = vadd.f32 1e-05, %v42_v17 }
 0x124   :  { %v41_v19 = vpop.xlane.xlu1 %40 }
 0x125   :  { %101 = vrsqrt.f32 %v44_v18  ;;  %v43_v20 = vmul.f32 0.0078125, %v41_v19 }
 0x127   :  { %v45_v21 = vadd.f32 1e-05, %v43_v20 }
 0x129   :  { %103 = vrsqrt.f32 %v45_v21 }
 0x132   :  { %v102_v22 = vpop.eup %101 }
 0x133   :  { %v48_v23 = vmul.f32 %v102_v22, %v34_v10 }
 0x135   :  { %v57_v26 = vmul.f32 %v82_v24, %v48_v23 }
 0x136   :  { %v104_v25 = vpop.eup %103 }
 0x137   :  { %v49_v27 = vmul.f32 %v104_v25, %v35_v14  ;;  %v66_v30 = vadd.f32 %v83_v28, %v57_v26 }
 0x139   :  { %v58_v29 = vmul.f32 %v82_v24, %v49_v27 }
 0x13b   :  { %v67_v31 = vadd.f32 %v83_v28, %v58_v29 }
 0x13d   :  { %v99_v32 = vpack.c.bf16 %v67_v31, %v66_v30 }
 0x13f   :  { %100 = vst [vmem:[%s149_s4] sm:$0xff] %v99_v32  }

// kernel: gpt2_small_forward.16
= control target key start
LH: loop header
LB: loop body
LE: loop exit
PB: predicated region body
PF: predicated region fallthrough
CT: control target
= control target key end

     0   :  { %s1026_s12 = smov 0   ;;  %s1028_s13 = smov 0   ;;  %s1144_s0 = inlined_call_operand.vmem [shape: bf16[2,8,384], index: 0, kind: input, shape index: {}, may-alias: {0,1,2}]   ;;  %s1145_s1 = inlined_call_operand.vmem [shape: bf16[2,8,384], index: 1, kind: input, shape index: {}, may-alias: {0,1,2}]   ;;  %s1146_s2 = inlined_call_operand.vmem [shape: bf16[2,8,384], index: 2, kind: input, shape index: {}, may-alias: {0,1,2}]   ;;  %s1147_s3 = inlined_call_operand.vmem [shape: bf16[2,8,128], index: 3, kind: output, shape index: {}]  }
   0x1   :  { %s1030_s14 = smov 0  }
   0x2 LB: > { %s25_s15 = sadd.s32 1, %s995_s13  ;;  %p843_p0 = scmp.ge.s32.totalorder %s999_s14, 1  ;;  %s999_s14 = sphi %s1030_s14, %s13_s14   ;;  %s995_s13 = sphi %s1028_s13, %s1149_s13   ;;  %s991_s12 = sphi %s1026_s12, %s1148_s12  }
   0x3   : > { %p27_p1 = scmp.ge.s32.totalorder %s25_s15, 2  ;;  %p179_p2 = scmp.lt.s32.totalorder %s999_s14, 3 }
   0x5   : > { %s1151_s15 = smov (%p27_p1, %s25_s15), 0  ;;  %p180_p3 = pnand %p843_p0, %p179_p2 }
   0x6   : > { %p221_p4 = scmp.lt.s32.totalorder (!%p180_p3), %s991_s12, 1  ;;  %s1003_s23 = smov (!%p180_p3), 96  }
   0x7   : > { %183 = sbr.rel (%p180_p3) target bundleno = 1527 (0x5f7), region = 32  ;;  %s1004_s24 = smov (!%p180_p3), 64  }
   0x8   : > { %s1005_s25 = smov (!%p180_p3), 32  }
   0xc   : > { %v1001_v0 = vmov 0.0   ;;  %vm1002_vm0 = vmmov 0   ;;  %s1153_s12 = smov (!%p221_p4, %s991_s12), 1  ;;  %vm255_vm1 = vcmask 261120   ;;  %vm302_vm2 = vcmask 64512  }
   0xd   : > { %881 = vmatprep.subr.bf16.mxu0 %v1001_v0  ;;  %883 = vmatprep.mubr.msk.bf16.mxu0 %vm1002_vm0, %v1001_v0  ;;  %s1053_s16 = smul.u32 12, %s1153_s12  ;;  %vm318_vm3 = vcmask 1043456   ;;  %s847_s29 = sshll.u32 %s1153_s12, 2  ;;  %vm487_vm4 = vcmask 519168   ;;  %vm721_vm5 = vcmask 1043968  }
   0xe   : > { %887 = vmatprep.subr.bf16.mxu1 %v1001_v0  ;;  %889 = vmatprep.mubr.msk.bf16.mxu1 %vm1002_vm0, %v1001_v0  ;;  %s248_s5 = scalar_lea.vmem %s1147_s3, %s847_s29 }
   0xf   : > { %s784_s19 = scalar_lea.vmem %s1145_s1, %s1053_s16  ;;  %s229_s22 = scalar_lea.vmem %s1144_s0, %s1053_s16 }
  0x10   : > { %v848_v1 = vld [vmem:[%s784_s19 + $0x4] sm:$0xf]  ;;  %v251_v3 = vld [vmem:[%s229_s22] sm:$0xf]  ;;  %s788_s28 = scalar_lea.vmem %s1146_s2, %s1053_s16 }
  0x11   : > { %v260_v2 = vsel %vm255_vm1, %v848_v1, 0  ;;  %v254_v4 = vmul.bf16 1043676725, %v251_v3  ;;  %v853_v10 = vcombine.low %v848_v1, %v848_v1  ;;  %v1079_v17 = vld [vmem:[%s788_s28 + $0x8] sm:$0xf] }
  0x12   : > { %882 = vmatpush3.bf16.xpose.msra.mxu0 %v260_v2  ;;  %v320_v18 = vsel %vm318_vm3, %v1079_v17, 0  ;;  %v855_v61 = vcombine.low %v1079_v17, %v1079_v17 }
  0x13   : > { %899 = vmatprep.subr.bf16.mxu0 %v1001_v0  ;;  %370 = vrot.lane.b32.xlu1 %v853_v10, %s1003_s23  ;;  %v852_v11 = vcombine.low %v254_v4, %v254_v4 }
  0x14   : > { %888 = vmatpush3.bf16.msra.mxu1 %v320_v18 }
  0x15   : > { %893 = vmatprep.subr.bf16.mxu1 %v1001_v0 }
  0x17   : > { %365 = vrot.lane.b32.xlu1 %v852_v11, %s1003_s23 }
  0x19   : > { %884 = vmatmul.mubr.msk.bf16.vlgmr.msra.gmra.mxu0 %vm255_vm1, %v254_v4 }
  0x1a   : > { %901 = vmatprep.mubr.msk.bf16.mxu0 %vm1002_vm0, %v1001_v0 }
  0x1b   : > { %489 = vrot.lane.b32.xlu1 %v852_v11, %s1004_s24 }
  0x1f   : > { %601 = vrot.lane.b32.xlu1 %v853_v10, %s1005_s25 }
  0x23   : > { %599 = vrot.lane.b32.xlu1 %v852_v11, %s1005_s25 }
  0x85   : > { %v371_v21 = vpop.permute.xlu1 %370 }
  0x86   : > { %v376_v23 = vsel %vm255_vm1, %v371_v21, 0 }
  0x89   : > { %v366_v25 = vpop.permute.xlu1 %365 }
  0x8d   : > { %v490_v27 = vpop.permute.xlu1 %489 }
  0x91   : > { %v602_v29 = vpop.permute.xlu1 %601 }
  0x92   : > { %v607_v30 = vsel %vm255_vm1, %v602_v29, 0 }
  0x95   : > { %v600_v31 = vpop.permute.xlu1 %599 }
  0xd9   : > { %v296_v5 = vpop.f32.mrf.mxu0 }
  0xda   : > { %v303_v6 = vsel %vm302_vm2, %v296_v5, -inf }
  0xdb   : > { %304 = vmax.xlane.f32.xlu0 %v303_v6  ;;  %v885_v7 = vpop.f32.mrf.mxu0 }
  0xdd   : > { %v299_v8 = vpop.f32.mrf.mxu0 }
  0xdf   : > { %v886_v9 = vpop.f32.mrf.mxu0 }
 0x164   : > { %v305_v12 = vpop.xlane.xlu0 %304 }
 0x165   : > { %v306_v13 = vsub.f32 %v296_v5, %v305_v12 }
 0x167   : > { %v307_v14 = vmul.f32 1.442695, %v306_v13 }
 0x169   : > { %961 = vpow2.f32 %v307_v14 }
 0x176   : > { %v962_v15 = vpop.eup %961 }
 0x177   : > { %v309_v16 = vsel %vm302_vm2, %v962_v15, 0.0 }
 0x178   : > { %310 = vadd.xlane.f32.xlu0 %v309_v16 }
 0x18e   : > { %491 = vrot.lane.b32.xlu0 %v853_v10, %s1004_s24 }
 0x201   : > { %v311_v19 = vpop.xlane.xlu0 %310 }
 0x202   : > { %963 = vrcp.f32 %v311_v19 }
 0x205   : > { %v492_v26 = vpop.permute.xlu0 %491 }
 0x206   : > { %v497_v28 = vsel %vm255_vm1, %v492_v26, 0 }
 0x20f   : > { %v964_v20 = vpop.eup %963 }
 0x210   : > { %v313_v22 = vmul.f32 %v964_v20, %v962_v15 }
 0x212   : > { %v314_v24 = vpack.c.bf16 %v313_v22, %v313_v22 }
 0x214   : > { %890 = vmatmul.mubr.msk.bf16.vlgmr.msra.gmra.mxu1 %vm302_vm2, %v314_v24 }
 0x215   : > { %894 = vmatpush3.bf16.xpose.msra.mxu1 %v376_v23  ;;  %895 = vmatprep.mubr.msk.bf16.mxu1 %vm1002_vm0, %v1001_v0 }
 0x216   : > { %905 = vmatprep.subr.bf16.mxu1 %v1001_v0 }
 0x21c   : > { %896 = vmatmul.mubr.msk.bf16.vlgmr.msra.gmra.mxu1 %vm255_vm1, %v366_v25 }
 0x21d   : > { %906 = vmatpush3.bf16.xpose.msra.mxu1 %v497_v28  ;;  %907 = vmatprep.mubr.msk.bf16.mxu1 %vm1002_vm0, %v1001_v0 }
 0x21e   : > { %917 = vmatprep.subr.bf16.mxu1 %v1001_v0 }
 0x224   : > { %908 = vmatmul.mubr.msk.bf16.vlgmr.msra.gmra.mxu1 %vm255_vm1, %v490_v27 }
 0x225   : > { %918 = vmatpush3.bf16.xpose.msra.mxu1 %v607_v30  ;;  %919 = vmatprep.mubr.msk.bf16.mxu1 %vm1002_vm0, %v1001_v0 }
 0x22c   : > { %920 = vmatmul.mubr.msk.bf16.vlgmr.msra.gmra.mxu1 %vm255_vm1, %v600_v31 }
 0x2d4   : > { %v1100_v32 = vpop.f32.mrf.mxu1 }
 0x2d6   : > { %v891_v33 = vpop.f32.mrf.mxu1 }
 0x2d8   : > { %v359_v34 = vpop.f32.mrf.mxu1 }
 0x2da   : > { %v892_v35 = vpop.f32.mrf.mxu1 }
 0x2dc   : > { %v412_v36 = vpop.f32.mrf.mxu1 }
 0x2dd   : > { %v418_v37 = vsel %vm302_vm2, %v412_v36, -inf }
 0x2de   : > { %419 = vmax.xlane.f32.xlu1 %v418_v37  ;;  %v897_v38 = vpop.f32.mrf.mxu1 }
 0x2e0   : > { %v415_v39 = vpop.f32.mrf.mxu1 }
 0x2e2   : > { %v898_v40 = vpop.f32.mrf.mxu1 }
 0x2e4   : > { %v533_v41 = vpop.f32.mrf.mxu1 }
 0x2e5   : > { %v539_v42 = vsel %vm302_vm2, %v533_v41, -inf }
 0x2e6   : > { %540 = vmax.xlane.f32.xlu0 %v539_v42  ;;  %v909_v43 = vpop.f32.mrf.mxu1 }
 0x2e8   : > { %v536_v44 = vpop.f32.mrf.mxu1 }
 0x2ea   : > { %v910_v45 = vpop.f32.mrf.mxu1 }
 0x2ec   : > { %v643_v46 = vpop.f32.mrf.mxu1 }
 0x2ed   : > { %v649_v47 = vsel %vm302_vm2, %v643_v46, -inf }
 0x2ee   : > { %650 = vmax.xlane.f32.xlu1 %v649_v47  ;;  %v921_v48 = vpop.f32.mrf.mxu1 }
 0x2f0   : > { %v646_v49 = vpop.f32.mrf.mxu1 }
 0x2f2   : > { %v922_v50 = vpop.f32.mrf.mxu1 }
 0x367   : > { %v420_v51 = vpop.xlane.xlu1 %419 }
 0x368   : > { %v421_v52 = vsub.f32 %v412_v36, %v420_v51 }
 0x36a   : > { %v422_v53 = vmul.f32 1.442695, %v421_v52 }
 0x36c   : > { %965 = vpow2.f32 %v422_v53 }
 0x36f   : > { %v541_v54 = vpop.xlane.xlu0 %540 }
 0x370   : > { %v542_v55 = vsub.f32 %v533_v41, %v541_v54 }
 0x372   : > { %v543_v56 = vmul.f32 1.442695, %v542_v55 }
 0x374   : > { %967 = vpow2.f32 %v543_v56 }
 0x377   : > { %v651_v62 = vpop.xlane.xlu1 %650 }
 0x378   : > { %v652_v63 = vsub.f32 %v643_v46, %v651_v62 }
 0x379   : > { %v966_v57 = vpop.eup %965 }
 0x37a   : > { %v424_v58 = vsel %vm302_vm2, %v966_v57, 0.0  ;;  %v653_v1 = vmul.f32 1.442695, %v652_v63 }
 0x37b   : > { %425 = vadd.xlane.f32.xlu1 %v424_v58 }
 0x37c   : > { %969 = vpow2.f32 %v653_v1 }
 0x381   : > { %v968_v59 = vpop.eup %967 }
 0x382   : > { %v545_v60 = vsel %vm302_vm2, %v968_v59, 0.0 }
 0x383   : > { %546 = vadd.xlane.f32.xlu0 %v545_v60 }
 0x389   : > { %v970_v2 = vpop.eup %969 }
 0x38a   : > { %v655_v3 = vsel %vm302_vm2, %v970_v2, 0.0 }
 0x38c   : > { %551 = vrot.lane.b32.xlu1 %v855_v61, %s1004_s24 }
 0x399   : > { %433 = vrot.lane.b32.xlu0 %v855_v61, %s1003_s23 }
 0x3b0   : > { %656 = vadd.xlane.f32.xlu1 %v655_v3 }
 0x3c1   : > { %661 = vrot.lane.b32.xlu1 %v855_v61, %s1005_s25 }
 0x404   : > { %v426_v4 = vpop.xlane.xlu1 %425 }
 0x405   : > { %971 = vrcp.f32 %v426_v4 }
 0x408   : > { %v552_v10 = vpop.permute.xlu1 %551 }
 0x409   : > { %v557_v12 = vsel %vm318_vm3, %v552_v10, 0 }
 0x40c   : > { %v547_v5 = vpop.xlane.xlu0 %546 }
 0x40d   : > { %973 = vrcp.f32 %v547_v5 }
 0x410   : > { %v434_v6 = vpop.permute.xlu0 %433 }
 0x411   : > { %v439_v7 = vsel %vm318_vm3, %v434_v6, 0 }
 0x412   : > { %v972_v8 = vpop.eup %971  ;;  %900 = vmatpush3.bf16.msra.mxu0 %v439_v7 }
 0x413   : > { %911 = vmatprep.subr.bf16.mxu0 %v1001_v0  ;;  %v428_v9 = vmul.f32 %v972_v8, %v966_v57 }
 0x415   : > { %v429_v11 = vpack.c.bf16 %v428_v9, %v428_v9 }
 0x417   : > { %902 = vmatmul.mubr.msk.bf16.vlgmr.msra.gmra.mxu0 %vm302_vm2, %v429_v11 }
 0x418   : > { %912 = vmatpush3.bf16.msra.mxu0 %v557_v12  ;;  %913 = vmatprep.mubr.msk.bf16.mxu0 %vm1002_vm0, %v1001_v0 }
 0x419   : > { %923 = vmatprep.subr.bf16.mxu0 %v1001_v0 }
 0x41a   : > { %v974_v13 = vpop.eup %973 }
 0x41b   : > { %v549_v14 = vmul.f32 %v974_v13, %v968_v59 }
 0x41d   : > { %v550_v15 = vpack.c.bf16 %v549_v14, %v549_v14 }
 0x41f   : > { %914 = vmatmul.mubr.msk.bf16.vlgmr.msra.gmra.mxu0 %vm302_vm2, %v550_v15 }
 0x420   : > { %925 = vmatprep.mubr.msk.bf16.mxu0 %vm1002_vm0, %v1001_v0 }
 0x439   : > { %v657_v16 = vpop.xlane.xlu1 %656 }
 0x43a   : > { %975 = vrcp.f32 %v657_v16 }
 0x43d   : > { %v662_v17 = vpop.permute.xlu1 %661 }
 0x43e   : > { %v667_v18 = vsel %vm318_vm3, %v662_v17, 0 }
 0x43f   : > { %924 = vmatpush3.bf16.msra.mxu0 %v667_v18 }
 0x447   : > { %v976_v19 = vpop.eup %975 }
 0x448   : > { %v659_v20 = vmul.f32 %v976_v19, %v970_v2 }
 0x44a   : > { %v660_v21 = vpack.c.bf16 %v659_v20, %v659_v20 }
 0x44c   : > { %926 = vmatmul.mubr.msk.bf16.vlgmr.msra.gmra.mxu0 %vm302_vm2, %v660_v21 }
 0x4d7   : > { %v475_v22 = vpop.f32.mrf.mxu0 }
 0x4d8   : > { %482 = vrot.lane.b32.xlu1 %v475_v22, %s1005_s25 }
 0x4d9   : > { %v903_v23 = vpop.f32.mrf.mxu0 }
 0x4db   : > { %v478_v24 = vpop.f32.mrf.mxu0 }
 0x4dd   : > { %v904_v25 = vpop.f32.mrf.mxu0 }
 0x4df   : > { %v593_v26 = vpop.f32.mrf.mxu0 }
 0x4e1   : > { %v915_v0 = vpop.f32.mrf.mxu0 }
 0x4e3   : > { %v596_v27 = vpop.f32.mrf.mxu0 }
 0x4e5   : > { %v916_v28 = vpop.f32.mrf.mxu0 }
 0x50c   : > { %v703_v29 = vpop.f32.mrf.mxu0 }
 0x50d   : > { %710 = vrot.lane.b32.xlu0 %v703_v29, %s1005_s25 }
 0x50e   : > { %v927_v30 = vpop.f32.mrf.mxu0 }
 0x510   : > { %v706_v31 = vpop.f32.mrf.mxu0 }
 0x512   : > { %v928_v33 = vpop.f32.mrf.mxu0 }
 0x54a   : > { %v483_v34 = vpop.permute.xlu1 %482 }
 0x54b   : > { %v485_v35 = vsel %vm255_vm1, %v1100_v32, %v483_v34 }
 0x54c   : > { %v486_v36 = vpack.c.bf16 %v485_v35, %v485_v35 }
 0x54e   : > { %488 = vst.msk [vmem:[%s248_s5] sm:$0xf] %vm487_vm4, %v486_v36 }
 0x57f   : > { %v711_v37 = vpop.permute.xlu0 %710 }
 0x580   : > { %v713_v38 = vsel %vm255_vm1, %v593_v26, %v711_v37 }
 0x581   : > { %v864_v39 = vpack.c.bf16 %v713_v38, %v713_v38 }
 0x583   : > { %718 = vrot.lane.b32.xlu0 %v864_v39, %s1004_s24 }
 0x5f5   : > { %v719_v40 = vpop.permute.xlu0 %718 }
 0x5f6   : > { %722 = vst.msk [vmem:[%s248_s5] sm:$0xf] %vm721_vm5, %v719_v40 }
 0x5f7 PF: > { %s13_s14 = sadd.s32 1, %s999_s14   ;;  %s1148_s12 = smov %s995_s13 }
 0x5f8   : > { %p10_p5 = scmp.ge.s32.totalorder %s13_s14, 4   ;;  %s1149_s13 = smov %s1151_s15 }
 0x5fa   :  { %12 = sbr.rel (!%p10_p5) target bundleno = 2 (0x2), region = 68 }

// kernel: gpt2_small_forward.19
= control target key start
LH: loop header
LB: loop body
LE: loop exit
PB: predicated region body
PF: predicated region fallthrough
CT: control target
= control target key end

     0   :  { %v274_v1 = vmov 0   ;;  %v191_v18 = vlaneseq  ;;  %s355_s1 = inlined_call_operand.vmem [shape: bf16[128,256], index: 1, kind: input, shape index: {}]   ;;  %s356_s0 = inlined_call_operand.vmem [shape: bf16[16,128], index: 0, kind: input, shape index: {}]   ;;  %s357_s2 = inlined_call_operand.vmem [shape: f32[1,256], index: 2, kind: input, shape index: {}]   ;;  %s358_s3 = inlined_call_operand.vmem [shape: bf16[16,256], index: 3, kind: output, shape index: {}]  }
   0x1   :  { %v249_v0 = vld [vmem:[%s355_s1 + $0x74] ss:$8 sps:$4 sm:$0xff]   ;;  %163 = vmatprep.mubr.bf16.mxu0 %v274_v1  ;;  %v251_v2 = vld [vmem:[%s355_s1 + $0x70] ss:$8 sps:$4 sm:$0xff]   ;;  %v252_v3 = vld [vmem:[%s355_s1 + $0x64] ss:$8 sps:$4 sm:$0xff]  }
   0x2   :  { %131 = vmatprep.subr.bf16.mxu0 %v249_v0  ;;  %v254_v4 = vld [vmem:[%s355_s1 + $0x60] ss:$8 sps:$4 sm:$0xff]   ;;  %v255_v5 = vld [vmem:[%s355_s1 + $0x54] ss:$8 sps:$4 sm:$0xff]   ;;  %v257_v6 = vld [vmem:[%s355_s1 + $0x50] ss:$8 sps:$4 sm:$0xff]  }
   0x3   :  { %132 = vmatpush1.bf16.msra.mxu0 %v251_v2  ;;  %v258_v7 = vld [vmem:[%s355_s1 + $0x44] ss:$8 sps:$4 sm:$0xff]   ;;  %v260_v8 = vld [vmem:[%s355_s1 + $0x40] ss:$8 sps:$4 sm:$0xff]   ;;  %v261_v9 = vld [vmem:[%s355_s1 + $0x34] ss:$8 sps:$4 sm:$0xff]  }
   0x4   :  { %133 = vmatprep.subr.bf16.mxu0 %v252_v3  ;;  %v263_v10 = vld [vmem:[%s355_s1 + $0x30] ss:$8 sps:$4 sm:$0xff]   ;;  %v264_v11 = vld [vmem:[%s355_s1 + $0x24] ss:$8 sps:$4 sm:$0xff]   ;;  %v266_v12 = vld [vmem:[%s355_s1 + $0x20] ss:$8 sps:$4 sm:$0xff]  }
   0x5   :  { %v267_v13 = vld [vmem:[%s355_s1 + $0x14] ss:$8 sps:$4 sm:$0xff]   ;;  %v269_v14 = vld [vmem:[%s355_s1 + $0x10] ss:$8 sps:$4 sm:$0xff]   ;;  %v270_v15 = vld [vmem:[%s355_s1 + $0x4] ss:$8 sps:$4 sm:$0xff]  }
   0x6   :  { %v272_v16 = vld [vmem:[%s355_s1] ss:$8 sps:$4 sm:$0xff]   ;;  %v192_v19 = vshrl.u32 %v191_v18, 7 }
   0x7   :  { %134 = vmatpush1.bf16.msra.mxu0 %v254_v4  ;;  %v273_v17 = vld [vmem:[%s356_s0] sm:$0xff]  }
   0x8   :  { %135 = vmatprep.subr.bf16.mxu0 %v255_v5  ;;  %v193_v20 = vsub.s32 0, %v192_v19  ;;  %v189_v21 = vld [vmem:[%s357_s2] sm:$0x3]  ;;  %v197_v22 = vsub.s32 1, %v192_v19 }
   0xa   :  { %v194_v23 = vrot.slane %v189_v21, %v193_v20  ;;  %v198_v24 = vrot.slane %v189_v21, %v197_v22 }
   0xb   :  { %136 = vmatpush1.bf16.msra.mxu0 %v257_v6 }
   0xc   :  { %137 = vmatprep.subr.bf16.mxu0 %v258_v7 }
   0xf   :  { %138 = vmatpush1.bf16.msra.mxu0 %v260_v8 }
  0x10   :  { %139 = vmatprep.subr.bf16.mxu0 %v261_v9 }
  0x13   :  { %140 = vmatpush1.bf16.msra.mxu0 %v263_v10 }
  0x14   :  { %141 = vmatprep.subr.bf16.mxu0 %v264_v11 }
  0x17   :  { %142 = vmatpush1.bf16.msra.mxu0 %v266_v12 }
  0x18   :  { %143 = vmatprep.subr.bf16.mxu0 %v267_v13 }
  0x1b   :  { %144 = vmatpush1.bf16.msra.mxu0 %v269_v14 }
  0x1c   :  { %145 = vmatprep.subr.bf16.mxu0 %v270_v15 }
  0x1f   :  { %146 = vmatpush1.bf16.msra.mxu0 %v272_v16 }
  0x22   :  { %164 = vmatmul.mubr.bf16.vlgmr.msra.gmra.mxu0 %v273_v17 }
  0xe2   :  { %v165_v25 = vpop.f32.mrf.mxu0 }
  0xe3   :  { %v201_v26 = vadd.f32 %v194_v23, %v165_v25 }
  0xe4   :  { %v167_v27 = vpop.f32.mrf.mxu0 }
  0xe5   :  { %v202_v28 = vadd.f32 %v198_v24, %v167_v27  ;;  %v205_v30 = vmax.f32 %v201_v26, 0.0 }
  0xe6   :  { %v169_v29 = vpop.f32.mrf.mxu0 }
  0xe7   :  { %v206_v31 = vmax.f32 %v202_v28, 0.0  ;;  %v203_v32 = vadd.f32 %v194_v23, %v169_v29 }
  0xe8   :  { %v171_v33 = vpop.f32.mrf.mxu0 }
  0xe9   :  { %v246_v34 = vpack.c.bf16 %v206_v31, %v205_v30  ;;  %v204_v35 = vadd.f32 %v198_v24, %v171_v33  ;;  %v207_v36 = vmax.f32 %v203_v32, 0.0 }
  0xeb   :  { %221 = vst [vmem:[%s358_s3] sm:$0xff] %v246_v34  ;;  %v208_v37 = vmax.f32 %v204_v35, 0.0 }
  0xed   :  { %v247_v38 = vpack.c.bf16 %v208_v37, %v207_v36 }
  0xef   :  { %222 = vst [vmem:[%s358_s3 + $0x8] sm:$0xff] %v247_v38 }

// kernel: gpt2_small_forward.20
= control target key start
LH: loop header
LB: loop body
LE: loop exit
PB: predicated region body
PF: predicated region fallthrough
CT: control target
= control target key end

     0   :  { %s385_s1 = inlined_call_operand.vmem [shape: bf16[256,128], index: 1, kind: input, shape index: {}]   ;;  %s386_s0 = inlined_call_operand.vmem [shape: bf16[16,256], index: 0, kind: input, shape index: {}]   ;;  %s387_s2 = inlined_call_operand.vmem [shape: f32[1,128], index: 2, kind: input, shape index: {}]   ;;  %s388_s3 = inlined_call_operand.vmem [shape: bf16[16,128], index: 3, kind: output, shape index: {}]  }
   0x1   :  { %v286_v0 = vld [vmem:[%s385_s1 + $0x78] sm:$0xff]   ;;  %v288_v2 = vld [vmem:[%s385_s1 + $0x70] sm:$0xff]   ;;  %v290_v4 = vld [vmem:[%s385_s1 + $0x68] sm:$0xff]  }
   0x2   :  { %v287_v1 = vld [vmem:[%s385_s1 + $0x38] sm:$0xff]   ;;  %264 = vmatprep.subr.bf16.mxu0 %v286_v0  ;;  %v289_v3 = vld [vmem:[%s385_s1 + $0x30] sm:$0xff]   ;;  %v291_v5 = vld [vmem:[%s385_s1 + $0x28] sm:$0xff]  }
   0x3   :  { %265 = vmatpush3.bf16.msra.mxu0 %v287_v1  ;;  %v292_v6 = vld [vmem:[%s385_s1 + $0x60] sm:$0xff]   ;;  %v294_v8 = vld [vmem:[%s385_s1 + $0x58] sm:$0xff]   ;;  %v296_v10 = vld [vmem:[%s385_s1 + $0x50] sm:$0xff]  }
   0x4   :  { %266 = vmatprep.subr.bf16.mxu0 %v288_v2  ;;  %v293_v7 = vld [vmem:[%s385_s1 + $0x20] sm:$0xff]   ;;  %v295_v9 = vld [vmem:[%s385_s1 + $0x18] sm:$0xff]   ;;  %v297_v12 = vld [vmem:[%s385_s1 + $0x10] sm:$0xff]  }
   0x5   :  { %v304_v11 = vld [vmem:[%s386_s0 + $0x4] ss:$8 sps:$4 sm:$0xff]   ;;  %v302_v17 = vld [vmem:[%s386_s0] ss:$8 sps:$4 sm:$0xff]  }
   0x6   :  { %195 = vmatprep.mubr.bf16.mxu0 %v304_v11  ;;  %v298_v13 = vld [vmem:[%s385_s1 + $0x48] sm:$0xff]   ;;  %v300_v15 = vld [vmem:[%s385_s1 + $0x40] sm:$0xff]  }
   0x7   :  { %267 = vmatpush3.bf16.msra.mxu0 %v289_v3  ;;  %v299_v14 = vld [vmem:[%s385_s1 + $0x8] sm:$0xff]   ;;  %v301_v16 = vld [vmem:[%s385_s1] sm:$0xff]  }
   0x8   :  { %268 = vmatprep.subr.bf16.mxu0 %v290_v4  ;;  %v254_v22 = vld [vmem:[%s387_s2] ss:$0 sm:$0xff] }
   0xb   :  { %269 = vmatpush3.bf16.msra.mxu0 %v291_v5 }
   0xc   :  { %270 = vmatprep.subr.bf16.mxu0 %v292_v6 }
   0xf   :  { %271 = vmatpush3.bf16.msra.mxu0 %v293_v7 }
  0x10   :  { %272 = vmatprep.subr.bf16.mxu0 %v294_v8 }
  0x13   :  { %273 = vmatpush3.bf16.msra.mxu0 %v295_v9 }
  0x14   :  { %274 = vmatprep.subr.bf16.mxu0 %v296_v10 }
  0x17   :  { %275 = vmatpush3.bf16.msra.mxu0 %v297_v12 }
  0x18   :  { %276 = vmatprep.subr.bf16.mxu0 %v298_v13 }
  0x1b   :  { %277 = vmatpush3.bf16.msra.mxu0 %v299_v14 }
  0x1c   :  { %278 = vmatprep.subr.bf16.mxu0 %v300_v15 }
  0x1f   :  { %279 = vmatpush3.bf16.msra.mxu0 %v301_v16 }
  0x22   :  { %196 = vmatmul.mubr.bf16.vlgmr.msra.gmra.mxu0 %v302_v17 }
  0xe2   :  { %v280_v18 = vpop.f32.mrf.mxu0 }
  0xe4   :  { %v281_v19 = vpop.f32.mrf.mxu0 }
  0xe5   :  { %v282_v21 = vadd.f32 %v281_v19, %v280_v18 }
  0xe6   :  { %v283_v20 = vpop.f32.mrf.mxu0 }
  0xe7   :  { %v220_v25 = vadd.f32 %v282_v21, %v254_v22 }
  0xe8   :  { %v284_v23 = vpop.f32.mrf.mxu0 }
  0xe9   :  { %v285_v24 = vadd.f32 %v284_v23, %v283_v20 }
  0xeb   :  { %v221_v26 = vadd.f32 %v285_v24, %v254_v22 }
  0xed   :  { %v262_v27 = vpack.c.bf16 %v221_v26, %v220_v25 }
  0xef   :  { %263 = vst [vmem:[%s388_s3] sm:$0xff] %v262_v27  }

// kernel: gpt2_small_forward.29
= control target key start
LH: loop header
LB: loop body
LE: loop exit
PB: predicated region body
PF: predicated region fallthrough
CT: control target
= control target key end

     0   :  { %v473_v1 = vmov 0   ;;  %v350_v34 = vlaneseq  ;;  %s620_s1 = inlined_call_operand.vmem [shape: bf16[128,512], index: 1, kind: input, shape index: {}]   ;;  %s621_s0 = inlined_call_operand.vmem [shape: bf16[16,128], index: 0, kind: input, shape index: {}]   ;;  %s622_s2 = inlined_call_operand.vmem [shape: f32[1,512], index: 2, kind: input, shape index: {}]   ;;  %s623_s3 = inlined_call_operand.vmem [shape: f32[16,512], index: 3, kind: output, shape index: {}]  }
   0x1   :  { %v424_v0 = vld [vmem:[%s620_s1 + $0xe4] ss:$16 sps:$4 sm:$0xff]   ;;  %267 = vmatprep.mubr.bf16.mxu0 %v473_v1  ;;  %310 = vmatprep.mubr.bf16.mxu1 %v473_v1  ;;  %v426_v2 = vld [vmem:[%s620_s1 + $0xec] ss:$16 sps:$4 sm:$0xff]   ;;  %v428_v3 = vld [vmem:[%s620_s1 + $0xe0] ss:$16 sps:$4 sm:$0xff]  }
   0x2   :  { %235 = vmatprep.subr.bf16.mxu0 %v424_v0  ;;  %v429_v4 = vld [vmem:[%s620_s1 + $0xe8] ss:$16 sps:$4 sm:$0xff]   ;;  %278 = vmatprep.subr.bf16.mxu1 %v426_v2  ;;  %v430_v5 = vld [vmem:[%s620_s1 + $0xc4] ss:$16 sps:$4 sm:$0xff]   ;;  %v432_v6 = vld [vmem:[%s620_s1 + $0xcc] ss:$16 sps:$4 sm:$0xff]  }
   0x3   :  { %236 = vmatpush1.bf16.msra.mxu0 %v428_v3  ;;  %279 = vmatpush1.bf16.msra.mxu1 %v429_v4  ;;  %v434_v7 = vld [vmem:[%s620_s1 + $0xc0] ss:$16 sps:$4 sm:$0xff]   ;;  %v435_v8 = vld [vmem:[%s620_s1 + $0xc8] ss:$16 sps:$4 sm:$0xff]   ;;  %v436_v9 = vld [vmem:[%s620_s1 + $0xa4] ss:$16 sps:$4 sm:$0xff]  }
   0x4   :  { %237 = vmatprep.subr.bf16.mxu0 %v430_v5  ;;  %280 = vmatprep.subr.bf16.mxu1 %v432_v6  ;;  %v438_v10 = vld [vmem:[%s620_s1 + $0xac] ss:$16 sps:$4 sm:$0xff]   ;;  %v440_v11 = vld [vmem:[%s620_s1 + $0xa0] ss:$16 sps:$4 sm:$0xff]   ;;  %v441_v12 = vld [vmem:[%s620_s1 + $0xa8] ss:$16 sps:$4 sm:$0xff]  }
   0x5   :  { %v442_v13 = vld [vmem:[%s620_s1 + $0x84] ss:$16 sps:$4 sm:$0xff]   ;;  %v444_v14 = vld [vmem:[%s620_s1 + $0x8c] ss:$16 sps:$4 sm:$0xff]   ;;  %v446_v15 = vld [vmem:[%s620_s1 + $0x80] ss:$16 sps:$4 sm:$0xff]  }
   0x6   :  { %v447_v16 = vld [vmem:[%s620_s1 + $0x88] ss:$16 sps:$4 sm:$0xff]   ;;  %v448_v17 = vld [vmem:[%s620_s1 + $0x64] ss:$16 sps:$4 sm:$0xff]   ;;  %v450_v18 = vld [vmem:[%s620_s1 + $0x6c] ss:$16 sps:$4 sm:$0xff]  }
   0x7   :  { %238 = vmatpush1.bf16.msra.mxu0 %v434_v7  ;;  %281 = vmatpush1.bf16.msra.mxu1 %v435_v8  ;;  %v452_v19 = vld [vmem:[%s620_s1 + $0x60] ss:$16 sps:$4 sm:$0xff]   ;;  %v453_v20 = vld [vmem:[%s620_s1 + $0x68] ss:$16 sps:$4 sm:$0xff]   ;;  %v454_v21 = vld [vmem:[%s620_s1 + $0x44] ss:$16 sps:$4 sm:$0xff]  }
   0x8   :  { %239 = vmatprep.subr.bf16.mxu0 %v436_v9  ;;  %282 = vmatprep.subr.bf16.mxu1 %v438_v10  ;;  %v456_v22 = vld [vmem:[%s620_s1 + $0x4c] ss:$16 sps:$4 sm:$0xff]   ;;  %v458_v23 = vld [vmem:[%s620_s1 + $0x40] ss:$16 sps:$4 sm:$0xff]   ;;  %v459_v24 = vld [vmem:[%s620_s1 + $0x48] ss:$16 sps:$4 sm:$0xff]  }
   0x9   :  { %v460_v25 = vld [vmem:[%s620_s1 + $0x24] ss:$16 sps:$4 sm:$0xff]   ;;  %v462_v26 = vld [vmem:[%s620_s1 + $0x2c] ss:$16 sps:$4 sm:$0xff]   ;;  %v464_v27 = vld [vmem:[%s620_s1 + $0x20] ss:$16 sps:$4 sm:$0xff]  }
   0xa   :  { %v465_v28 = vld [vmem:[%s620_s1 + $0x28] ss:$16 sps:$4 sm:$0xff]   ;;  %v466_v29 = vld [vmem:[%s620_s1 + $0x4] ss:$16 sps:$4 sm:$0xff]   ;;  %v468_v30 = vld [vmem:[%s620_s1 + $0xc] ss:$16 sps:$4 sm:$0xff]  }
   0xb   :  { %240 = vmatpush1.bf16.msra.mxu0 %v440_v11  ;;  %283 = vmatpush1.bf16.msra.mxu1 %v441_v12  ;;  %v470_v31 = vld [vmem:[%s620_s1] ss:$16 sps:$4 sm:$0xff]   ;;  %v471_v32 = vld [vmem:[%s620_s1 + $0x8] ss:$16 sps:$4 sm:$0xff]   ;;  %v351_v35 = vshrl.u32 %v350_v34, 7 }
   0xc   :  { %241 = vmatprep.subr.bf16.mxu0 %v442_v13  ;;  %284 = vmatprep.subr.bf16.mxu1 %v444_v14  ;;  %v472_v33 = vld [vmem:[%s621_s0] sm:$0xff]  }
   0xd   :  { %v352_v36 = vsub.s32 0, %v351_v35  ;;  %v360_v37 = vsub.s32 2, %v351_v35  ;;  %v348_v38 = vld [vmem:[%s622_s2] sm:$0xf]  ;;  %v356_v39 = vsub.s32 1, %v351_v35  ;;  %v364_v40 = vsub.s32 3, %v351_v35 }
   0xf   :  { %242 = vmatpush1.bf16.msra.mxu0 %v446_v15  ;;  %285 = vmatpush1.bf16.msra.mxu1 %v447_v16  ;;  %v353_v41 = vrot.slane %v348_v38, %v352_v36  ;;  %v361_v42 = vrot.slane %v348_v38, %v360_v37  ;;  %v357_v43 = vrot.slane %v348_v38, %v356_v39 }
  0x10   :  { %243 = vmatprep.subr.bf16.mxu0 %v448_v17  ;;  %286 = vmatprep.subr.bf16.mxu1 %v450_v18  ;;  %v365_v44 = vrot.slane %v348_v38, %v364_v40 }
  0x13   :  { %244 = vmatpush1.bf16.msra.mxu0 %v452_v19  ;;  %287 = vmatpush1.bf16.msra.mxu1 %v453_v20 }
  0x14   :  { %245 = vmatprep.subr.bf16.mxu0 %v454_v21  ;;  %288 = vmatprep.subr.bf16.mxu1 %v456_v22 }
  0x17   :  { %246 = vmatpush1.bf16.msra.mxu0 %v458_v23  ;;  %289 = vmatpush1.bf16.msra.mxu1 %v459_v24 }
  0x18   :  { %247 = vmatprep.subr.bf16.mxu0 %v460_v25  ;;  %290 = vmatprep.subr.bf16.mxu1 %v462_v26 }
  0x1b   :  { %248 = vmatpush1.bf16.msra.mxu0 %v464_v27  ;;  %291 = vmatpush1.bf16.msra.mxu1 %v465_v28 }
  0x1c   :  { %249 = vmatprep.subr.bf16.mxu0 %v466_v29  ;;  %292 = vmatprep.subr.bf16.mxu1 %v468_v30 }
  0x1f   :  { %250 = vmatpush1.bf16.msra.mxu0 %v470_v31  ;;  %293 = vmatpush1.bf16.msra.mxu1 %v471_v32 }
  0x22   :  { %268 = vmatmul.mubr.bf16.vlgmr.msra.gmra.mxu0 %v472_v33  ;;  %311 = vmatmul.mubr.bf16.vlgmr.msra.gmra.mxu1 %v472_v33 }
  0xe2   :  { %v269_v45 = vpop.f32.mrf.mxu0  ;;  %v312_v46 = vpop.f32.mrf.mxu1 }
  0xe3   :  { %v370_v47 = vadd.f32 %v353_v41, %v269_v45  ;;  %v372_v48 = vadd.f32 %v361_v42, %v312_v46 }
  0xe4   :  { %v271_v49 = vpop.f32.mrf.mxu0  ;;  %v314_v50 = vpop.f32.mrf.mxu1 }
  0xe5   :  { %378 = vst [vmem:[%s623_s3] sm:$0xff] %v370_v47  ;;  %380 = vst [vmem:[%s623_s3 + $0x10] sm:$0xff] %v372_v48  ;;  %v371_v51 = vadd.f32 %v357_v43, %v271_v49  ;;  %v373_v52 = vadd.f32 %v365_v44, %v314_v50 }
  0xe6   :  { %v273_v53 = vpop.f32.mrf.mxu0  ;;  %v316_v54 = vpop.f32.mrf.mxu1 }
  0xe7   :  { %379 = vst [vmem:[%s623_s3 + $0x8] sm:$0xff] %v371_v51  ;;  %381 = vst [vmem:[%s623_s3 + $0x18] sm:$0xff] %v373_v52  ;;  %v374_v55 = vadd.f32 %v353_v41, %v273_v53  ;;  %v376_v56 = vadd.f32 %v361_v42, %v316_v54 }
  0xe8   :  { %v275_v57 = vpop.f32.mrf.mxu0  ;;  %v318_v58 = vpop.f32.mrf.mxu1 }
  0xe9   :  { %382 = vst [vmem:[%s623_s3 + $0x20] sm:$0xff] %v374_v55  ;;  %384 = vst [vmem:[%s623_s3 + $0x30] sm:$0xff] %v376_v56  ;;  %v375_v59 = vadd.f32 %v357_v43, %v275_v57  ;;  %v377_v60 = vadd.f32 %v365_v44, %v318_v58 }
  0xeb   :  { %383 = vst [vmem:[%s623_s3 + $0x28] sm:$0xff] %v375_v59  ;;  %385 = vst [vmem:[%s623_s3 + $0x38] sm:$0xff] %v377_v60 }

// kernel: gpt2_small_forward.22
= control target key start
LH: loop header
LB: loop body
LE: loop exit
PB: predicated region body
PF: predicated region fallthrough
CT: control target
= control target key end

     0   :  { %s824_s12 = smov 0   ;;  %s826_s13 = smov 0   ;;  %s926_s0 = inlined_call_operand.vmem [shape: bf16[16,128], index: 0, kind: input, shape index: {}]   ;;  %s927_s1 = inlined_call_operand.vmem [shape: bf16[128,384], index: 1, kind: input, shape index: {}]   ;;  %s928_s2 = inlined_call_operand.vmem [shape: f32[1,384], index: 2, kind: input, shape index: {}]   ;;  %s929_s3 = inlined_call_operand.vmem [shape: bf16[16,384], index: 3, kind: output, shape index: {}]  }
   0x1   :  { %s828_s14 = smov 0   ;;  %s830_s15 = smov 0  }
   0x2   :  { %s832_s16 = smov 0  }
   0x3 LB: > { %s28_s17 = sadd.s32 1, %s796_s15  ;;  %s649_s18 = sadd.s32 4294967295, %s800_s16   ;;  %s800_s16 = sphi %s832_s16, %s13_s16   ;;  %s796_s15 = sphi %s830_s15, %s934_s15   ;;  %s792_s14 = sphi %s828_s14, %s933_s14   ;;  %s788_s13 = sphi %s826_s13, %s932_s13   ;;  %s784_s12 = sphi %s824_s12, %s931_s12  }
   0x4   : > { %p30_p0 = scmp.ge.s32.totalorder %s28_s17, 3  ;;  %p76_p1 = scmp.ne.s32.totalorder %s788_s13, %s784_s12 }
   0x5   : > { %p77_p2 = scmp.eq.s32.totalorder %s800_s16, 0  ;;  %p134_p4 = scmp.eq.s32.totalorder %s649_s18, 2 }
   0x6   : > { %s936_s17 = smov (%p30_p0, %s28_s17), 0  ;;  %s69_s20 = sadd.s32 1, %s788_s13 }
   0x7   : > { %p78_p3 = por %p77_p2, %p76_p1  ;;  %s65_s19 = ssub.s32 %s796_s15, %s936_s17 }
   0x8   : > { %p67_p5 = scmp.eq.s32.totalorder %s65_s19, 0  ;;  %p859_p6 = por %p134_p4, %p76_p1 }
   0x9   : > { %p653_p7 = scmp.ge.s32.totalorder %s800_s16, 3 }
   0xa   : > { %s864_s22 = scalar_select %p67_p5, %s788_s13, %s69_s20  }
   0xb   : > { %168 = sbr.rel (%p653_p7) target bundleno = 30 (0x1e), region = 20 }
  0x10   : > { %171 = sbr.rel (!%p78_p3) target bundleno = 30 (0x1e), region = 24  ;;  %s173_s23 = sand.u32 (%p78_p3), 1, %s788_s13  }
  0x11   : > { %s655_s24 = sshll.u32 (%p78_p3), %s796_s15, 2  ;;  %s654_s25 = sshll.u32 (%p78_p3), %s173_s23, 6 }
  0x12   : > { %s872_s28 = scalar_lea.vmem (%p78_p3), %s927_s1, %s655_s24  ;;  %s175_s29 = scalar_lea.vmem (%p78_p3), [#allocation3], %s654_s25 }
  0x13   : > { %v197_v0 = vld [vmem:[%s872_s28] sm:$0xf] (%p78_p3)  ;;  %v199_v1 = vld [vmem:[%s872_s28 + $0xc] sm:$0xf] (%p78_p3)  ;;  %v201_v2 = vld [vmem:[%s872_s28 + $0x18] sm:$0xf] (%p78_p3) }
  0x14   : > { %198 = vst [vmem:[%s175_s29] sm:$0xf] (%p78_p3), %v197_v0  ;;  %200 = vst [vmem:[%s175_s29 + $0x4] sm:$0xf] (%p78_p3), %v199_v1  ;;  %v203_v3 = vld [vmem:[%s872_s28 + $0x24] sm:$0xf] (%p78_p3) }
  0x15   : > { %v205_v4 = vld [vmem:[%s872_s28 + $0x30] sm:$0xf]  ;;  %202 = vst [vmem:[%s175_s29 + $0x8] sm:$0xf] %v201_v2  ;;  %204 = vst [vmem:[%s175_s29 + $0xc] sm:$0xf] %v203_v3 }
  0x16   : > { %206 = vst [vmem:[%s175_s29 + $0x10] sm:$0xf] %v205_v4  ;;  %v207_v5 = vld [vmem:[%s872_s28 + $0x3c] sm:$0xf]  ;;  %v209_v6 = vld [vmem:[%s872_s28 + $0x48] sm:$0xf] }
  0x17   : > { %v211_v7 = vld [vmem:[%s872_s28 + $0x54] sm:$0xf]  ;;  %208 = vst [vmem:[%s175_s29 + $0x14] sm:$0xf] %v207_v5  ;;  %210 = vst [vmem:[%s175_s29 + $0x18] sm:$0xf] %v209_v6 }
  0x18   : > { %212 = vst [vmem:[%s175_s29 + $0x1c] sm:$0xf] %v211_v7  ;;  %v213_v8 = vld [vmem:[%s872_s28 + $0x60] sm:$0xf]  ;;  %v215_v9 = vld [vmem:[%s872_s28 + $0x6c] sm:$0xf] }
  0x19   : > { %v217_v10 = vld [vmem:[%s872_s28 + $0x78] sm:$0xf]  ;;  %214 = vst [vmem:[%s175_s29 + $0x20] sm:$0xf] %v213_v8  ;;  %216 = vst [vmem:[%s175_s29 + $0x24] sm:$0xf] %v215_v9 }
  0x1a   : > { %218 = vst [vmem:[%s175_s29 + $0x28] sm:$0xf] %v217_v10  ;;  %v219_v11 = vld [vmem:[%s872_s28 + $0x84] sm:$0xf]  ;;  %v221_v12 = vld [vmem:[%s872_s28 + $0x90] sm:$0xf] }
  0x1b   : > { %v223_v13 = vld [vmem:[%s872_s28 + $0x9c] sm:$0xf]  ;;  %220 = vst [vmem:[%s175_s29 + $0x2c] sm:$0xf] %v219_v11  ;;  %222 = vst [vmem:[%s175_s29 + $0x30] sm:$0xf] %v221_v12 }
  0x1c   : > { %224 = vst [vmem:[%s175_s29 + $0x34] sm:$0xf] %v223_v13  ;;  %v225_v14 = vld [vmem:[%s872_s28 + $0xa8] sm:$0xf]  ;;  %v227_v15 = vld [vmem:[%s872_s28 + $0xb4] sm:$0xf] }
  0x1d   : > { %226 = vst [vmem:[%s175_s29 + $0x38] sm:$0xf] %v225_v14  ;;  %228 = vst [vmem:[%s175_s29 + $0x3c] sm:$0xf] %v227_v15 }
  0x1e PF: > { %p656_p8 = scmp.ge.s32.totalorder %s800_s16, 1  ;;  %p289_p9 = scmp.lt.s32.totalorder %s800_s16, 4 }
  0x20   : > { %p290_p10 = pnand %p656_p8, %p289_p9 }
  0x21   : > { %s296_s30 = sand.u32 (!%p290_p10), 1, %s784_s12   ;;  %p339_p11 = scmp.lt.s32.totalorder (!%p290_p10), %s792_s14, 2 }
  0x22   : > { %293 = sbr.rel (%p290_p10) target bundleno = 282 (0x11a), region = 69  ;;  %s657_s4 = sshll.u32 (!%p290_p10), %s296_s30, 6 }
  0x23   : > { %s298_s5 = scalar_lea.vmem (!%p290_p10), [#allocation3], %s657_s4  ;;  %s658_s18 = sshll.u32 (!%p290_p10), %s296_s30, 3 }
  0x24   : > { %s328_s19 = scalar_lea.vmem (!%p290_p10), [#allocation4], %s658_s18 }
  0x27   : > { %v802_v16 = vmov 0.0   ;;  %vm803_vm0 = vmmov 0   ;;  %v753_v17 = vld [vmem:[%s298_s5 + $0x38] sm:$0xff]   ;;  %v754_v18 = vld [vmem:[%s298_s5 + $0x30] sm:$0xff]   ;;  %v755_v19 = vld [vmem:[%s298_s5 + $0x28] sm:$0xff]   ;;  %s340_s8 = scalar_select %p339_p11, %s792_s14, 2 }
  0x28   : > { %691 = vmatprep.subr.bf16.mxu0 %v802_v16  ;;  %707 = vmatprep.mubr.msk.bf16.mxu0 %vm803_vm0, %v802_v16  ;;  %v756_v20 = vld [vmem:[%s298_s5 + $0x20] sm:$0xff]   ;;  %v757_v21 = vld [vmem:[%s298_s5 + $0x18] sm:$0xff]   ;;  %v758_v22 = vld [vmem:[%s298_s5 + $0x10] sm:$0xff]   ;;  %s672_s20 = sshll.u32 (%p859_p6), %s792_s14, 2 }
  0x29   : > { %692 = vmatpush3.bf16.msra.mxu0 %v753_v17  ;;  %v759_v23 = vld [vmem:[%s298_s5 + $0x8] sm:$0xff]   ;;  %v760_v24 = vld [vmem:[%s298_s5] sm:$0xff]   ;;  %s341_s11 = scalar_lea.vmem %s928_s2, %s340_s8  ;;  %s504_s25 = scalar_lea.vmem (%p859_p6), %s929_s3, %s672_s20 }
  0x2a   : > { %693 = vmatprep.subr.bf16.mxu0 %v802_v16  ;;  %v761_v25 = vld [vmem:[%s926_s0] sm:$0xff]  }
  0x2b   : > { %v668_v27 = vld [vmem:[%s341_s11] ss:$0 sm:$0xff] }
  0x2d   : > { %694 = vmatpush3.bf16.msra.mxu0 %v754_v18 }
  0x2e   : > { %695 = vmatprep.subr.bf16.mxu0 %v802_v16 }
  0x31   : > { %696 = vmatpush3.bf16.msra.mxu0 %v755_v19 }
  0x32   : > { %697 = vmatprep.subr.bf16.mxu0 %v802_v16 }
  0x35   : > { %698 = vmatpush3.bf16.msra.mxu0 %v756_v20 }
  0x36   : > { %699 = vmatprep.subr.bf16.mxu0 %v802_v16 }
  0x39   : > { %700 = vmatpush3.bf16.msra.mxu0 %v757_v21 }
  0x3a   : > { %701 = vmatprep.subr.bf16.mxu0 %v802_v16 }
  0x3d   : > { %702 = vmatpush3.bf16.msra.mxu0 %v758_v22 }
  0x3e   : > { %703 = vmatprep.subr.bf16.mxu0 %v802_v16 }
  0x41   : > { %704 = vmatpush3.bf16.msra.mxu0 %v759_v23 }
  0x42   : > { %705 = vmatprep.subr.bf16.mxu0 %v802_v16 }
  0x45   : > { %706 = vmatpush3.bf16.msra.mxu0 %v760_v24 }
  0x48   : > { %708 = vmatmul.mubr.bf16.vlgmr.msra.gmra.mxu0 %v761_v25 }
 0x108   : > { %v458_v26 = vpop.f32.mrf.mxu0 }
 0x109   : > { %v481_v30 = vadd.f32 %v668_v27, %v458_v26 }
 0x10a   : > { %v709_v28 = vpop.f32.mrf.mxu0 }
 0x10c   : > { %v461_v29 = vpop.f32.mrf.mxu0 }
 0x10d   : > { %v482_v31 = vadd.f32 %v668_v27, %v461_v29  ;;  %499 = sbr.rel (!%p859_p6) target bundleno = 282 (0x11a), region = 85 }
 0x10e   : > { %v710_v32 = vpop.f32.mrf.mxu0 }
 0x10f   : > { %v680_v33 = vpack.c.bf16 %v482_v31, %v481_v30 }
 0x111   : > { %681 = vst [vmem:[%s328_s19] sm:$0xff] %v680_v33  }
 0x118   : > { %v521_v34 = vld [vmem:[%s328_s19] sm:$0xf]  ;;  %v523_v35 = vld [vmem:[%s328_s19 + $0x4] sm:$0xf] }
 0x119   : > { %522 = vst [vmem:[%s504_s25] sm:$0xf] %v521_v34  ;;  %524 = vst [vmem:[%s504_s25 + $0xc] sm:$0xf] %v523_v35 }
 0x11a PF: > { %s13_s16 = sadd.s32 1, %s800_s16   ;;  %s931_s12 = smov %s788_s13 }
 0x11b   : > { %p10_p12 = scmp.ge.s32.totalorder %s13_s16, 5   ;;  %s932_s13 = smov %s864_s22 }
 0x11c   : > { %s933_s14 = smov %s796_s15  ;;  %s934_s15 = smov %s936_s17 }
 0x11d   :  { %12 = sbr.rel (!%p10_p12) target bundleno = 3 (0x3), region = 163 }

</bundles_post_ra>
